<compile_context>
chip_gen: v5e
topology: v5e:2x2
jax: 0.10.0
libtpu: 0.0.40
codegen_flags: <defaults>
</compile_context>

<pallas_src>
import functools

import jax
import jax.numpy as jnp
from jax.experimental import pallas as pl
from jax.experimental.pallas import tpu as pltpu

CPAD = 8     # input channel dim (3) zero-padded to 8
SUB = 256    # in-kernel sub-chunk of points (rows) per MLP pass

_MAX_TN_CACHE = None


def _max_tn():
    """Per-generation point-tile cap. v5e's 128-wide MXU already runs K=128 at full
    rate, so bigger tiles are diminishing returns there; v6e/v7x want larger tiles."""
    global _MAX_TN_CACHE
    if _MAX_TN_CACHE is None:
        tn = 1024
        try:
            kind = jax.devices()[0].device_kind.lower()
            if "v5 lite" in kind or "v5e" in kind or "v5lite" in kind:
                tn = 512
        except Exception:
            pass
        _MAX_TN_CACHE = tn
    return _MAX_TN_CACHE


def _round_up(v, m):
    return ((v + m - 1) // m) * m


def _choose_tiles(n):
    """Returns (tn, sub, n_pad): point-tile size, in-kernel sub-chunk size, padded N."""
    sub = min(SUB, _round_up(n, 16))
    tn = min(_max_tn(), _round_up(n, sub))     # tn is always a multiple of sub
    n_pad = _round_up(n, tn)
    return tn, sub, n_pad


def _choose_feature_splits(b):
    """v7x has 2 TensorCores; a single cloud can't fill both via the batch axis, so
    split the 1024 layer-3 features into 2 'parallel' column blocks (layers 1-2 are
    recomputed per split, ~7% extra FLOPs).  No effect on v5e/v6e (1 TC)."""
    return 2 if b == 1 else 1


# ----------------------------- Pallas kernels -------------------------------

def _point_mlp_max_kernel(x_ref, w1_ref, b1_ref, w2_ref, b2_ref, w3_ref, b3_ref,
                          out_ref, acc_ref, *, relu_last, n_valid, n_pad, tn, sub):
    """Grid (B, F, N//tn).  Per tile: 3-layer pointwise MLP (conv1d k=1 + fused BN,
    per-batch transform folded into W1), processed in `sub`-row chunks, with a
    per-sublane running max in acc_ref.  b3 + optional ReLU applied in finalize."""
    k = pl.program_id(2)

    @pl.when(k == 0)
    def _init():
        acc_ref[...] = jnp.full(acc_ref.shape, -jnp.inf, dtype=acc_ref.dtype)

    w1 = w1_ref[0]        # (CPAD, C1) f32 (transform folded in for encoder pass)
    b1 = b1_ref[...]      # (1, C1)    f32
    w2 = w2_ref[...]      # (C1, C2)   bf16
    b2 = b2_ref[...]      # (1, C2)    f32
    w3 = w3_ref[...]      # (C2, C3f)  bf16

    # Static loop over sub-chunks of the tile: keeps the (rows, C3f) f32 layer-3
    # intermediate at <= (SUB, 1024) ~ 1 MB while the DMA tile (tn rows) stays big.
    for c in range(tn // sub):
        x = x_ref[0, pl.ds(c * sub, sub), :]                            # (sub, CPAD) f32
        h = jnp.dot(x, w1, preferred_element_type=jnp.float32) + b1
        h = jnp.maximum(h, 0.0)                                          # relu(bn1(conv1))
        h = jnp.dot(h.astype(w2.dtype), w2,
                    preferred_element_type=jnp.float32) + b2             # bf16 MXU, f32 acc
        h = jnp.maximum(h, 0.0)                                          # relu(bn2(conv2))
        h = jnp.dot(h.astype(w3.dtype), w3,
                    preferred_element_type=jnp.float32)                  # b3 hoisted to finalize

        # Mask zero-padded tail rows to -inf.  Statically, only the sub-chunks that
        # can overlap the padded rows of the LAST tile pay for the select; for earlier
        # tiles the predicate is all-true and the result is unchanged.
        if n_pad - tn + (c + 1) * sub > n_valid:
            row = k * tn + c * sub + jax.lax.broadcasted_iota(jnp.int32, (sub, 1), 0)
            h = jnp.where(row < n_valid, h, -jnp.inf)

        # Per-sublane running max: (sub, C3f) -> (sub//8, 8, C3f), reduce axis 0 with
        # pure VPU maxes (no XLU); the 8->1 cross-sublane reduce happens in finalize.
        acc_ref[...] = jnp.maximum(acc_ref[...],
                                   jnp.max(h.reshape(sub // 8, 8, -1), axis=0))

    @pl.when(k == pl.num_programs(2) - 1)
    def _finalize():
        g = jnp.max(acc_ref[...], axis=0, keepdims=True) + b3_ref[...]   # single 8->1 reduce
        if relu_last:                                                    # STN: relu(bn3(conv3))
            g = jnp.maximum(g, 0.0)                                      # encoder: bn3(conv3)
        out_ref[...] = g.reshape(1, 1, -1)


def point_mlp_max(x_nc, mlp_params, *, relu_last, n_valid, tn, sub, feature_splits=1):
    """x_nc: (B, n_pad, CPAD) f32 with n_pad % tn == 0 (zero-padded tail rows).
    mlp_params: (w1 (Bw, CPAD, C1) f32, b1 (1,C1) f32,
                 w2 (C1, C2) bf16,      b2 (1,C2) f32,
                 w3 (C2, C3) bf16,      b3 (1,C3) f32)  -> (B, C3) f32."""
    B, n_pad, Cin = x_nc.shape
    w1, b1, w2, b2, w3, b3 = mlp_params
    Bw = w1.shape[0]
    C1, C2, C3 = w1.shape[2], w2.shape[1], w3.shape[1]
    nk = n_pad // tn
    fs = feature_splits
    assert C3 % (fs * 128) == 0 and tn % sub == 0
    C3f = C3 // fs

    if Bw == 1:                      # shared W1 (STN pass: no input transform)
        w1_map = lambda b, f, k: (0, 0, 0)
    else:                            # per-batch W1 (encoder pass: trans folded in)
        w1_map = lambda b, f, k: (b, 0, 0)

    kernel = functools.partial(_point_mlp_max_kernel, relu_last=relu_last,
                               n_valid=n_valid, n_pad=n_pad, tn=tn, sub=sub)
    out = pl.pallas_call(
        kernel,
        out_shape=jax.ShapeDtypeStruct((B, 1, C3), jnp.float32),
        grid_spec=pltpu.PrefetchScalarGridSpec(
            num_scalar_prefetch=0,
            grid=(B, fs, nk),
            in_specs=[
                pl.BlockSpec((1, tn, Cin), lambda b, f, k: (b, k, 0)),
                pl.BlockSpec((1, Cin, C1), w1_map),
                pl.BlockSpec((1, C1), lambda b, f, k: (0, 0)),
                pl.BlockSpec((C1, C2), lambda b, f, k: (0, 0)),
                pl.BlockSpec((1, C2), lambda b, f, k: (0, 0)),
                pl.BlockSpec((C2, C3f), lambda b, f, k: (0, f)),
                pl.BlockSpec((1, C3f), lambda b, f, k: (0, f)),
            ],
            out_specs=pl.BlockSpec((1, 1, C3f), lambda b, f, k: (b, 0, f)),
            scratch_shapes=[pltpu.VMEM((8, C3f), jnp.float32)],   # per-sublane running max
        ),
        compiler_params=pltpu.CompilerParams(
            dimension_semantics=("parallel", "parallel", "arbitrary"),
            vmem_limit_bytes=32 * 1024 * 1024),
    )(x_nc, w1, b1, w2, b2, w3, b3)
    return out[:, 0, :]


def _fc_head_kernel(g_ref, w1_ref, b1_ref, w2_ref, b2_ref, w3_ref, b3_ref,
                    iden_ref, out_ref):
    """STN3d regression head: fc1/bn4/relu -> fc2/bn5/relu -> fc3 -> + identity."""
    h = jnp.dot(g_ref[...].astype(w1_ref.dtype), w1_ref[...],
                preferred_element_type=jnp.float32) + b1_ref[...]
    h = jnp.maximum(h, 0.0)
    h = jnp.dot(h.astype(w2_ref.dtype), w2_ref[...],
                preferred_element_type=jnp.float32) + b2_ref[...]
    h = jnp.maximum(h, 0.0)
    h = jnp.dot(h, w3_ref[...], preferred_element_type=jnp.float32) + b3_ref[...]
    out_ref[...] = h + iden_ref[...]


def fc_head(g, fc_params, iden):
    """g: (B, 1024) -> (B, 9).  Off the critical path; fc1/fc2 weights are bf16 to
    halve the one-shot weight DMA; B is padded to 8 rows so the output store is not
    a 1-row masked vst."""
    B, C0 = g.shape
    Bp = max(8, ((B + 7) // 8) * 8)
    if Bp != B:
        g = jnp.pad(g, ((0, Bp - B), (0, 0)))
    w1, b1, w2, b2, w3, b3 = fc_params
    C1, C2, C3 = w1.shape[1], w2.shape[1], w3.shape[1]
    out = pl.pallas_call(
        _fc_head_kernel,
        out_shape=jax.ShapeDtypeStruct((Bp, C3), jnp.float32),
        grid_spec=pltpu.PrefetchScalarGridSpec(
            num_scalar_prefetch=0,
            grid=(1,),
            in_specs=[
                pl.BlockSpec((Bp, C0), lambda i: (0, 0)),
                pl.BlockSpec((C0, C1), lambda i: (0, 0)),
                pl.BlockSpec((1, C1), lambda i: (0, 0)),
                pl.BlockSpec((C1, C2), lambda i: (0, 0)),
                pl.BlockSpec((1, C2), lambda i: (0, 0)),
                pl.BlockSpec((C2, C3), lambda i: (0, 0)),
                pl.BlockSpec((1, C3), lambda i: (0, 0)),
                pl.BlockSpec((1, C3), lambda i: (0, 0)),
            ],
            out_specs=pl.BlockSpec((Bp, C3), lambda i: (0, 0)),
        ),
        compiler_params=pltpu.CompilerParams(
            dimension_semantics=("arbitrary",)),
    )(g, w1, b1, w2, b2, w3, b3, iden)
    return out[:B]


# --------------------------- parameter setup (glue) --------------------------

def _dense(key, cout, cin, scale=0.1):
    kw, kb = jax.random.split(key)
    W = scale * jax.random.normal(kw, (cout, cin), dtype=jnp.float32)
    b = scale * jax.random.normal(kb, (cout,), dtype=jnp.float32)
    return W, b


def _bn(key, c):
    k1, k2, k3, k4 = jax.random.split(key, 4)
    gamma = 1.0 + 0.1 * jax.random.normal(k1, (c,), dtype=jnp.float32)
    beta = 0.1 * jax.random.normal(k2, (c,), dtype=jnp.float32)
    rmean = 0.1 * jax.random.normal(k3, (c,), dtype=jnp.float32)
    rvar = 1.0 + 0.1 * jnp.abs(jax.random.normal(k4, (c,), dtype=jnp.float32))
    return gamma, beta, rmean, rvar


def _fuse(W, b, bn=None, eps=1e-5, pad_in_to=None):
    """(Cout,Cin) weight + bias with optional eval-mode BN folded ->
    (Cin[_pad], Cout) matmul weight (f32) and (1, Cout) bias (f32)."""
    if bn is None:
        W_eff, b_eff = W.T, b
    else:
        gamma, beta, rmean, rvar = bn
        s = gamma / jnp.sqrt(rvar + eps)
        W_eff = W.T * s[None, :]
        b_eff = b * s + beta - rmean * s
    if pad_in_to is not None and W_eff.shape[0] < pad_in_to:
        W_eff = jnp.pad(W_eff, ((0, pad_in_to - W_eff.shape[0]), (0, 0)))
    return W_eff.astype(jnp.float32), b_eff.reshape(1, -1).astype(jnp.float32)


def init_params(key, channel=3):
    ks = jax.random.split(key, 17)
    p = {}
    # ---- STN3d point MLP (conv1..conv3 + bn1..bn3) ----
    W, b = _dense(ks[0], 64, channel);  s_w1, s_b1 = _fuse(W, b, _bn(ks[1], 64), pad_in_to=CPAD)
    W, b = _dense(ks[2], 128, 64);      s_w2, s_b2 = _fuse(W, b, _bn(ks[3], 128))
    W, b = _dense(ks[4], 1024, 128);    s_w3, s_b3 = _fuse(W, b, _bn(ks[5], 1024))
    p["stn_mlp"] = (s_w1[None], s_b1,                        # (1, 8, 64) shared W1, f32
                    s_w2.astype(jnp.bfloat16), s_b2,         # heavy matmuls in bf16
                    s_w3.astype(jnp.bfloat16), s_b3)
    # ---- STN3d FC head (fc1..fc3 + bn4, bn5) ----
    W, b = _dense(ks[6], 512, 1024);    f_w1, f_b1 = _fuse(W, b, _bn(ks[7], 512))
    W, b = _dense(ks[8], 256, 512);     f_w2, f_b2 = _fuse(W, b, _bn(ks[9], 256))
    W, b = _dense(ks[10], 9, 256);      f_w3, f_b3 = _fuse(W, b, None)
    p["stn_fc"] = (f_w1.astype(jnp.bfloat16), f_b1,
                   f_w2.astype(jnp.bfloat16), f_b2, f_w3, f_b3)
    p["iden"] = jnp.array([[1, 0, 0, 0, 1, 0, 0, 0, 1]], dtype=jnp.float32)
    # ---- PointNetEncoder convs (conv1..conv3 + bn1..bn3) ----
    W, b = _dense(ks[11], 64, channel); e_w1, e_b1 = _fuse(W, b, _bn(ks[12], 64), pad_in_to=CPAD)
    W, b = _dense(ks[13], 128, 64);     e_w2, e_b2 = _fuse(W, b, _bn(ks[14], 128))
    W, b = _dense(ks[15], 1024, 128);   e_w3, e_b3 = _fuse(W, b, _bn(ks[16], 1024))
    p["enc_mlp"] = (e_w1, e_b1,                              # (8, 64) f32 (trans folded at fwd)
                    e_w2.astype(jnp.bfloat16), e_b2,
                    e_w3.astype(jnp.bfloat16), e_b3)
    return p


# ------------------------------- forward pass --------------------------------

def pointnet_encoder_forward(x, params):
    """x: (B, channel=3, N) float32, same NCW convention as the PyTorch module.
    Returns (global_feature (B, 1024), trans (B, 3, 3), trans_feat=None)."""
    B, D, N = x.shape
    tn, sub, n_pad = _choose_tiles(N)
    fsplit = _choose_feature_splits(B)

    x_nc = jnp.transpose(x, (0, 2, 1))                       # (B, N, 3)
    # single fused constant pad: channels 3->CPAD (zeros) and points N->n_pad
    # (zeros, masked to -inf in-kernel on the tail sub-chunks).
    x_pad = jnp.pad(x_nc, ((0, 0), (0, n_pad - N), (0, CPAD - D)))   # (B, n_pad, 8)

    # ---- STN3d: point MLP + max (no input transform -> no identity bmm) ----
    g = point_mlp_max(x_pad, params["stn_mlp"], relu_last=True,
                      n_valid=N, tn=tn, sub=sub, feature_splits=fsplit)   # (B, 1024)
    trans9 = fc_head(g, params["stn_fc"], params["iden"])                 # (B, 9)
    trans = trans9.reshape(B, 3, 3)

    # ---- Encoder: fold bmm(x, trans) into W1:  (x@trans)@W1 == x@(trans@W1) ----
    e_w1, e_b1, e_w2, e_b2, e_w3, e_b3 = params["enc_mlp"]
    trans_pad = jnp.pad(trans, ((0, 0), (0, CPAD - 3), (0, CPAD - 3)))    # (B, 8, 8)
    w1_fold = jnp.einsum("bij,jc->bic", trans_pad, e_w1)                  # (B, 8, 64) f32
    enc_mlp = (w1_fold, e_b1, e_w2, e_b2, e_w3, e_b3)
    gfeat = point_mlp_max(x_pad, enc_mlp, relu_last=False,
                          n_valid=N, tn=tn, sub=sub, feature_splits=fsplit)  # (B, 1024)
    return gfeat, trans, None


if __name__ == "__main__":
    key = jax.random.PRNGKey(0)
    kx, kp = jax.random.split(key)
    B, D, N = 2, 3, 128
    x = jax.random.normal(kx, (B, D, N), dtype=jnp.float32)
    params = init_params(kp, channel=D)

    gfeat, trans, trans_feat = pointnet_encoder_forward(x, params)
    jax.block_until_ready((gfeat, trans))
    assert gfeat.shape == (B, 1024) and gfeat.dtype == jnp.float32
    assert trans.shape == (B, 3, 3) and trans_feat is None
    assert bool(jnp.all(jnp.isfinite(gfeat))) and bool(jnp.all(jnp.isfinite(trans)))

    # Also exercise the B==1 (feature-split parallel axis) and ragged-N (in-kernel
    # tail masking) paths.
    g1, t1, _ = pointnet_encoder_forward(x[:1, :, :100], params)
    jax.block_until_ready((g1, t1))
    assert g1.shape == (1, 1024) and t1.shape == (1, 3, 3)
    assert bool(jnp.all(jnp.isfinite(g1))) and bool(jnp.all(jnp.isfinite(t1)))

    print("KERNEL_OK")
</pallas_src>

<mosaic_0001>
module attributes {stable_mosaic.version = 11 : i64} {
  func.func @_point_mlp_max_kernel(%arg0: i32, %arg1: i32, %arg2: i32, %arg3: memref<1x128x8xf32, #tpu.memory_space<vmem>>, %arg4: memref<1x8x64xf32, #tpu.memory_space<vmem>>, %arg5: memref<1x64xf32, #tpu.memory_space<vmem>>, %arg6: memref<64x128xbf16, #tpu.memory_space<vmem>>, %arg7: memref<1x128xf32, #tpu.memory_space<vmem>>, %arg8: memref<128x1024xbf16, #tpu.memory_space<vmem>>, %arg9: memref<1x1024xf32, #tpu.memory_space<vmem>>, %arg10: memref<1x1x1024xf32, #tpu.memory_space<vmem>>, %arg11: memref<8x1024xf32, #tpu.memory_space<vmem>>) attributes {dimension_semantics = [#tpu.dimension_semantics<parallel>, #tpu.dimension_semantics<parallel>, #tpu.dimension_semantics<arbitrary>], iteration_bounds = array<i64: 2, 1, 1>, scalar_prefetch = 0 : i64, scratch_operands = 1 : i64, tpu.core_type = #tpu.core_type<tc>, window_params = [{transform_indices = @transform_0, window_bounds = array<i64: 1, 128, 8>}, {pipeline_mode = #tpu.pipeline_mode<synchronous>, transform_indices = @transform_1, window_bounds = array<i64: 1, 8, 64>}, {pipeline_mode = #tpu.pipeline_mode<synchronous>, transform_indices = @transform_2, window_bounds = array<i64: 1, 64>}, {pipeline_mode = #tpu.pipeline_mode<synchronous>, transform_indices = @transform_3, window_bounds = array<i64: 64, 128>}, {pipeline_mode = #tpu.pipeline_mode<synchronous>, transform_indices = @transform_4, window_bounds = array<i64: 1, 128>}, {transform_indices = @transform_5, window_bounds = array<i64: 128, 1024>}, {transform_indices = @transform_6, window_bounds = array<i64: 1, 1024>}, {transform_indices = @transform_7, window_bounds = array<i64: 1, 1, 1024>}]} {
    %c0_i32 = arith.constant 0 : i32
    %0 = arith.cmpi eq, %arg2, %c0_i32 : i32
    %1 = arith.extui %0 : i1 to i32
    %c0_i32_0 = arith.constant 0 : i32
    %2 = arith.cmpi ne, %1, %c0_i32_0 : i32
    scf.if %2 {
      %cst_25 = arith.constant 0xFF800000 : f32
      %32 = vector.broadcast %cst_25 : f32 to vector<8x1024xf32>
      %c0_26 = arith.constant 0 : index
      %c0_27 = arith.constant 0 : index
      %33 = vector.load %arg11[%c0_26, %c0_27] : memref<8x1024xf32, #tpu.memory_space<vmem>>, vector<8x1024xf32>
      tpu.vector_store %arg11[%c0_26, %c0_27], %32 {strides = array<i32>} : memref<8x1024xf32, #tpu.memory_space<vmem>>, vector<8x1024xf32>,
    } else {
    }
    %c0 = arith.constant 0 : index
    %c0_1 = arith.constant 0 : index
    %c0_2 = arith.constant 0 : index
    %3 = vector.load %arg4[%c0, %c0_1, %c0_2] : memref<1x8x64xf32, #tpu.memory_space<vmem>>, vector<1x8x64xf32>
    %4 = vector.shape_cast %3 : vector<1x8x64xf32> to vector<8x64xf32>
    %c0_3 = arith.constant 0 : index
    %c0_4 = arith.constant 0 : index
    %5 = vector.load %arg5[%c0_3, %c0_4] : memref<1x64xf32, #tpu.memory_space<vmem>>, vector<1x64xf32>
    %c0_5 = arith.constant 0 : index
    %c0_6 = arith.constant 0 : index
    %6 = vector.load %arg6[%c0_5, %c0_6] : memref<64x128xbf16, #tpu.memory_space<vmem>>, vector<64x128xbf16>
    %c0_7 = arith.constant 0 : index
    %c0_8 = arith.constant 0 : index
    %7 = vector.load %arg7[%c0_7, %c0_8] : memref<1x128xf32, #tpu.memory_space<vmem>>, vector<1x128xf32>
    %c0_9 = arith.constant 0 : index
    %c0_10 = arith.constant 0 : index
    %8 = vector.load %arg8[%c0_9, %c0_10] : memref<128x1024xbf16, #tpu.memory_space<vmem>>, vector<128x1024xbf16>
    %c0_11 = arith.constant 0 : index
    %c0_12 = arith.constant 0 : index
    %c0_13 = arith.constant 0 : index
    %9 = vector.load %arg3[%c0_11, %c0_12, %c0_13] : memref<1x128x8xf32, #tpu.memory_space<vmem>>, vector<1x128x8xf32>
    %10 = vector.shape_cast %9 : vector<1x128x8xf32> to vector<128x8xf32>
    %cst = arith.constant dense<0.000000e+00> : vector<128x64xf32>
    %11 = tpu.matmul %10, %4, %cst {dimension_numbers = #tpu.dot_dimension_numbers<[1], [0], [0], [1], [0, 0, 1, 1], [], []>} : vector<128x8xf32>, vector<8x64xf32>, vector<128x64xf32> -> vector<128x64xf32>
    %12 = vector.broadcast %5 : vector<1x64xf32> to vector<128x64xf32>
    %13 = arith.addf %11, %12 : vector<128x64xf32>
    %cst_14 = arith.constant 0.000000e+00 : f32
    %14 = vector.broadcast %cst_14 : f32 to vector<128x64xf32>
    %15 = arith.maximumf %13, %14 : vector<128x64xf32>
    %16 = arith.truncf %15 : vector<128x64xf32> to vector<128x64xbf16>
    %cst_15 = arith.constant dense<0.000000e+00> : vector<128x128xf32>
    %17 = tpu.matmul %16, %6, %cst_15 {dimension_numbers = #tpu.dot_dimension_numbers<[1], [0], [0], [1], [0, 0, 1, 1], [], []>} : vector<128x64xbf16>, vector<64x128xbf16>, vector<128x128xf32> -> vector<128x128xf32>
    %18 = vector.broadcast %7 : vector<1x128xf32> to vector<128x128xf32>
    %19 = arith.addf %17, %18 : vector<128x128xf32>
    %cst_16 = arith.constant 0.000000e+00 : f32
    %20 = vector.broadcast %cst_16 : f32 to vector<128x128xf32>
    %21 = arith.maximumf %19, %20 : vector<128x128xf32>
    %22 = arith.truncf %21 : vector<128x128xf32> to vector<128x128xbf16>
    %cst_17 = arith.constant dense<0.000000e+00> : vector<128x1024xf32>
    %23 = tpu.matmul %22, %8, %cst_17 {dimension_numbers = #tpu.dot_dimension_numbers<[1], [0], [0], [1], [0, 0, 1, 1], [], []>} : vector<128x128xbf16>, vector<128x1024xbf16>, vector<128x1024xf32> -> vector<128x1024xf32>
    %c0_18 = arith.constant 0 : index
    %c0_19 = arith.constant 0 : index
    %24 = vector.load %arg11[%c0_18, %c0_19] : memref<8x1024xf32, #tpu.memory_space<vmem>>, vector<8x1024xf32>
    %25 = vector.shape_cast %23 : vector<128x1024xf32> to vector<16x8x1024xf32>
    %cst_20 = arith.constant dense<0xFF800000> : vector<8x1024xf32>
    %26 = vector.multi_reduction <maximumf>, %25, %cst_20 [0] : vector<16x8x1024xf32> to vector<8x1024xf32>
    %27 = arith.maximumf %24, %26 : vector<8x1024xf32>
    %c0_21 = arith.constant 0 : index
    %c0_22 = arith.constant 0 : index
    %28 = vector.load %arg11[%c0_21, %c0_22] : memref<8x1024xf32, #tpu.memory_space<vmem>>, vector<8x1024xf32>
    tpu.vector_store %arg11[%c0_21, %c0_22], %27 {strides = array<i32>} : memref<8x1024xf32, #tpu.memory_space<vmem>>, vector<8x1024xf32>,
    %c0_i32_23 = arith.constant 0 : i32
    %29 = arith.cmpi eq, %arg2, %c0_i32_23 : i32
    %30 = arith.extui %29 : i1 to i32
    %c0_i32_24 = arith.constant 0 : i32
    %31 = arith.cmpi ne, %30, %c0_i32_24 : i32
    scf.if %31 {
      %c0_25 = arith.constant 0 : index
      %c0_26 = arith.constant 0 : index
      %32 = vector.load %arg11[%c0_25, %c0_26] : memref<8x1024xf32, #tpu.memory_space<vmem>>, vector<8x1024xf32>
      %cst_27 = arith.constant dense<0xFF800000> : vector<1024xf32>
      %33 = vector.multi_reduction <maximumf>, %32, %cst_27 [0] : vector<8x1024xf32> to vector<1024xf32>
      %34 = vector.shape_cast %33 : vector<1024xf32> to vector<1x1024xf32>
      %c0_28 = arith.constant 0 : index
      %c0_29 = arith.constant 0 : index
      %35 = vector.load %arg9[%c0_28, %c0_29] : memref<1x1024xf32, #tpu.memory_space<vmem>>, vector<1x1024xf32>
      %36 = arith.addf %34, %35 : vector<1x1024xf32>
      %cst_30 = arith.constant 0.000000e+00 : f32
      %37 = vector.broadcast %cst_30 : f32 to vector<1x1024xf32>
      %38 = arith.maximumf %36, %37 : vector<1x1024xf32>
      %39 = vector.shape_cast %38 : vector<1x1024xf32> to vector<1x1x1024xf32>
      %c0_31 = arith.constant 0 : index
      %c0_32 = arith.constant 0 : index
      %c0_33 = arith.constant 0 : index
      %40 = vector.load %arg10[%c0_31, %c0_32, %c0_33] : memref<1x1x1024xf32, #tpu.memory_space<vmem>>, vector<1x1x1024xf32>
      tpu.vector_store %arg10[%c0_31, %c0_32, %c0_33], %39 {strides = array<i32>} : memref<1x1x1024xf32, #tpu.memory_space<vmem>>, vector<1x1x1024xf32>,
    } else {
    }
    return
  }
  func.func @transform_0(%arg0: i32, %arg1: i32, %arg2: i32) -> (i32, i32, i32) {
    %c0_i32 = arith.constant 0 : i32
    %c0_i32_0 = arith.constant 0 : i32
    return %arg0, %arg2, %c0_i32 : i32, i32, i32
  }
  func.func @transform_1(%arg0: i32, %arg1: i32, %arg2: i32) -> (i32, i32, i32) {
    %c0_i32 = arith.constant 0 : i32
    %c0_i32_0 = arith.constant 0 : i32
    %c0_i32_1 = arith.constant 0 : i32
    %c0_i32_2 = arith.constant 0 : i32
    return %c0_i32, %c0_i32_0, %c0_i32_1 : i32, i32, i32
  }
  func.func @transform_2(%arg0: i32, %arg1: i32, %arg2: i32) -> (i32, i32) {
    %c0_i32 = arith.constant 0 : i32
    %c0_i32_0 = arith.constant 0 : i32
    %c0_i32_1 = arith.constant 0 : i32
    return %c0_i32, %c0_i32_0 : i32, i32
  }
  func.func @transform_3(%arg0: i32, %arg1: i32, %arg2: i32) -> (i32, i32) {
    %c0_i32 = arith.constant 0 : i32
    %c0_i32_0 = arith.constant 0 : i32
    %c0_i32_1 = arith.constant 0 : i32
    return %c0_i32, %c0_i32_0 : i32, i32
  }
  func.func @transform_4(%arg0: i32, %arg1: i32, %arg2: i32) -> (i32, i32) {
    %c0_i32 = arith.constant 0 : i32
    %c0_i32_0 = arith.constant 0 : i32
    %c0_i32_1 = arith.constant 0 : i32
    return %c0_i32, %c0_i32_0 : i32, i32
  }
  func.func @transform_5(%arg0: i32, %arg1: i32, %arg2: i32) -> (i32, i32) {
    %c0_i32 = arith.constant 0 : i32
    %c0_i32_0 = arith.constant 0 : i32
    return %c0_i32, %arg1 : i32, i32
  }
  func.func @transform_6(%arg0: i32, %arg1: i32, %arg2: i32) -> (i32, i32) {
    %c0_i32 = arith.constant 0 : i32
    %c0_i32_0 = arith.constant 0 : i32
    return %c0_i32, %arg1 : i32, i32
  }
  func.func @transform_7(%arg0: i32, %arg1: i32, %arg2: i32) -> (i32, i32, i32) {
    %c0_i32 = arith.constant 0 : i32
    %c0_i32_0 = arith.constant 0 : i32
    return %arg0, %c0_i32, %arg1 : i32, i32, i32
  }
}

</mosaic_0001>

<bundles_post_ra>
// kernel: tpu_custom_call.1
= control target key start
LH: loop header
LB: loop body
LE: loop exit
PB: predicated region body
PF: predicated region fallthrough
CT: control target
= control target key end

     0   :  { %12 = vsyncpa [#allocation4], 0  ;;  %s2746_s0 = inlined_call_operand.vmem [shape: f32[2,128,8], index: 0, kind: input, shape index: {}]   ;;  %s2747_s1 = inlined_call_operand.vmem [shape: f32[1,8,64], index: 1, kind: input, shape index: {}]   ;;  %s2748_s2 = inlined_call_operand.vmem [shape: f32[1,64], index: 2, kind: input, shape index: {}]   ;;  %s2749_s3 = inlined_call_operand.vmem [shape: bf16[64,128], index: 3, kind: input, shape index: {}]   ;;  %s2750_s4 = inlined_call_operand.vmem [shape: f32[1,128], index: 4, kind: input, shape index: {}]   ;;  %s2751_s5 = inlined_call_operand.hbm [shape: bf16[128,1024], index: 5, kind: input, shape index: {}]   ;;  %s2752_s6 = inlined_call_operand.vmem [shape: f32[1,1024], index: 6, kind: input, shape index: {}]   ;;  %s2753_s7 = inlined_call_operand.hbm [shape: f32[2,1,1024], index: 7, kind: output, shape index: {}]  }
   0x1   :  { %13 = vsyncpa [#allocation5], 0 }
   0x2   :  { %15 = vsyncpa [#allocation5 + $0x1], 0  ;;  %s2444_s24 = smov 0   ;;  %s2446_s25 = smov 0  }
   0x3   :  { %s2448_s26 = smov 0   ;;  %s2450_s27 = smov 0  }
   0x4   :  { %s2452_s28 = smov 0   ;;  %s2454_s29 = smov 0  }
   0x5 LB: > { %s1832_s30 = sadd.s32 4294967295, %s2399_s29   ;;  %s1833_s8 = sadd.s32 4294967294, %s2399_s29   ;;  %s2399_s29 = sphi %s2454_s29, %s21_s29   ;;  %s2395_s28 = sphi %s2452_s28, %s2760_s28   ;;  %s2391_s27 = sphi %s2450_s27, %s2759_s27   ;;  %s2387_s26 = sphi %s2448_s26, %s2758_s26   ;;  %s2383_s25 = sphi %s2446_s25, %s2757_s25   ;;  %s2379_s24 = sphi %s2444_s24, %s2756_s24  }
   0x6   : > { %s40_s9 = sadd.s32 1, %s2395_s28  ;;  %s213_s10 = sadd.s32 1, %s2387_s26 }
   0x7   : > { %p42_p0 = scmp.ge.s32.totalorder %s40_s9, 2  ;;  %p223_p1 = scmp.ne.s32.totalorder %s2387_s26, %s2383_s25 }
   0x8   : > { %p224_p2 = scmp.eq.s32.totalorder %s1832_s30, 1  ;;  %p229_p3 = scmp.ne.s32.totalorder %s2383_s25, %s2379_s24 }
   0x9   : > { %s2762_s9 = smov (%p42_p0, %s40_s9), 0  ;;  %p230_p5 = scmp.eq.s32.totalorder %s1833_s8, 1 }
   0xa   : > { %p2484_p4 = por %p224_p2, %p223_p1  ;;  %s208_s12 = ssub.s32 %s2395_s28, %s2762_s9 }
   0xb   : > { %p1834_p6 = scmp.ge.s32.totalorder %s2399_s29, 1  ;;  %p211_p7 = scmp.eq.s32.totalorder %s208_s12, 0 }
   0xc   : > { %p2491_p8 = por %p230_p5, %p229_p3  ;;  %p237_p9 = scmp.lt.s32.totalorder %s2399_s29, 3 }
   0xd   : > { %s2497_s14 = scalar_select %p211_p7, %s2387_s26, %s213_s10  }
   0xe   : > { %p238_p10 = pnand %p1834_p6, %p237_p9  ;;  %p2231_p11 = scmp.eq.s32.totalorder %s1832_s30, 0 }
   0xf   : > { %s263_s17 = sshll.u32 %s2751_s5, 4  ;;  %s2401_s18 = smov [#allocation3]   ;;  %s264_s17 = int_to_ptr.hbm [resolvable:$true] %s263_s17 }
  0x10   : > { %p2223_p12 = pneg %p238_p10  ;;  %s265_s19 = sshll.u32 %s2401_s18, 4  ;;  %s266_s19 = int_to_ptr.vmem [resolvable:$true] %s265_s19 }
  0x11   : > { %s2402_s20 = smov 512   ;;  %s2403_s21 = smov 32  }
  0x12   : > { %p2224_p13 = pnand %p2231_p11, %p2223_p12  ;;  %302 = sbr.rel (%p238_p10) target bundleno = 717 (0x2cd), region = 48 }
  0x14   : > { %2226 = dma.hbm_to_vmem [thread:$0]  (!%p2224_p13), %s264_s17, 8192, %s266_s19, [#allocation4], %s2402_s20, %s2402_s20, %s2403_s21  }
  0x17   : > { %2370 = dma.done.wait (%p2231_p11), [#allocation4], 8192  }
  0x18   : > { %2372 = vsyncadd (%p2231_p11), [#allocation4], 4294959104  ;;  %p344_p0 = scmp.lt.s32.totalorder %s2391_s27, 1  ;;  %vm467_vm0 = vcmask 64512   ;;  %v373_v0 = vld [vmem:[%s2747_s1] sm:$0xff]  ;;  %v2147_v17 = vld [vmem:[%s2749_s3 + $0x18] sm:$0xff] }
  0x19   : > { %531 = vmatpush.msra.mxu0 %v373_v0  ;;  %2212 = vmatpush.msra.mxu3 %v373_v0  ;;  %v2146_v18 = vld [vmem:[%s2749_s3 + $0x10] sm:$0xff]  ;;  %v2145_v19 = vld [vmem:[%s2749_s3 + $0x8] sm:$0xff]  ;;  %v2144_v20 = vld [vmem:[%s2749_s3] sm:$0xff]  ;;  %vm632_vm1 = vcmask 523264   ;;  %vm1696_vm2 = vcmask 1042434   ;;  %vm1694_vm3 = vcmask 1040384  }
  0x1a   : > { %s345_s22 = scalar_select %p344_p0, %s2391_s27, 1  ;;  %661 = vmatpush.bf16.msra.mxu1 %v2147_v17  ;;  %2213 = vmatpush.bf16.msra.mxu2 %v2147_v17  ;;  %v2559_v22 = vld [vmem:[%s2748_s2] ss:$0 sm:$0xff]  ;;  %v2117_v46 = vld [vmem:[#allocation3 + $0x1c8] sm:$0xf]  ;;  %vm1698_vm4 = vcmask 1041408  }
  0x1b   : > { %v2209_v47 = vld [vmem:[#allocation3 + $0x1e4] sm:$0xf0]  ;;  %v2109_v48 = vld [vmem:[#allocation3 + $0x1c0] sm:$0xf]  ;;  %v2205_v53 = vld [vmem:[#allocation3 + $0x1cc] sm:$0xf] }
  0x1c   : > { %s2143_s23 = sshll.u32 %s345_s22, 7  ;;  %v2118_v51 = vor.u32 %v2209_v47, %v2117_v46  ;;  %v2208_v52 = vld [vmem:[#allocation3 + $0x1dc] sm:$0xf0]  ;;  %v2119_v54 = vld [vmem:[#allocation3 + $0x1e8] sm:$0xf0]  ;;  %s340_s17 = sand.u32 1, %s2383_s25  }
  0x1d   : > { %s2507_s10 = scalar_lea.vmem %s2746_s0, %s2143_s23  ;;  %v2110_v56 = vor.u32 %v2208_v52, %v2109_v48  ;;  %v2122_v57 = vor.u32 %v2205_v53, %v2119_v54  ;;  %v2085_v58 = vld [vmem:[#allocation3 + $0x188] sm:$0xf]  ;;  %v2077_v60 = vld [vmem:[#allocation3 + $0x180] sm:$0xf]  ;;  %v2204_v63 = vld [vmem:[#allocation3 + $0x1c4] sm:$0xf] }
  0x1e   : > { %v448_v1 = vld [vmem:[%s2507_s10] sm:$0xff]  ;;  %v449_v2 = vld [vmem:[%s2507_s10 + $0x8] sm:$0xff]  ;;  %v450_v3 = vld [vmem:[%s2507_s10 + $0x10] sm:$0xff]  ;;  %662 = vmatpush.bf16.msra.mxu1 %v2146_v18  ;;  %2214 = vmatpush.bf16.msra.mxu2 %v2146_v18  ;;  %s1840_s18 = sshll.u32 %s340_s17, 3  ;;  %vm1702_vm5 = vcmask 1046534   ;;  %s2140_s19 = sshll.u32 %s2391_s27, 3 }
  0x1f   : > { %1843 = vmatmul.msk.f32.vlgmr.msra.gmra.mxu0 %vm467_vm0, %v448_v1  ;;  %v457_v4 = vld [vmem:[%s2507_s10 + $0x48] sm:$0xff]  ;;  %v451_v5 = vld [vmem:[%s2507_s10 + $0x18] sm:$0xff]  ;;  %v458_v6 = vld [vmem:[%s2507_s10 + $0x50] sm:$0xff]  ;;  %s1723_s22 = scalar_lea.hbm %s2753_s7, %s2140_s19  ;;  %vm1700_vm6 = vcmask 1044484   ;;  %vm1704_vm7 = vcmask 1045508   ;;  %s342_s23 = scalar_lea.vmem [#allocation6], %s1840_s18 }
  0x20   : > { %1852 = vmatmul.msk.f32.vlgmr.msra.gmra.mxu3 %vm467_vm0, %v457_v4  ;;  %v452_v7 = vld [vmem:[%s2507_s10 + $0x20] sm:$0xff]  ;;  %v459_v8 = vld [vmem:[%s2507_s10 + $0x58] sm:$0xff]  ;;  %v453_v9 = vld [vmem:[%s2507_s10 + $0x28] sm:$0xff]  ;;  %1148 = vmatpush.bf16.msrb.mxu0 %v2118_v51  ;;  %s1725_s30 = sshll.u32 %s342_s23, 4  ;;  %s1727_s27 = sshll.u32 %s1723_s22, 4  ;;  %vm1706_vm8 = vcmask 1043456   ;;  %s1726_s30 = int_to_ptr.vmem [resolvable:$true] %s1725_s30  ;;  %s1728_s27 = int_to_ptr.hbm [resolvable:$true] %s1727_s27 }
  0x21   : > { %v460_v10 = vld [vmem:[%s2507_s10 + $0x60] sm:$0xff]  ;;  %v454_v11 = vld [vmem:[%s2507_s10 + $0x30] sm:$0xff]  ;;  %v461_v12 = vld [vmem:[%s2507_s10 + $0x68] sm:$0xff]  ;;  %s1711_s8 = scalar_lea.sflag [#allocation5], %s340_s17  ;;  %s2337_s18 = scalar_lea.hbm %s2753_s7, 16 }
  0x22   : > { %v455_v13 = vld [vmem:[%s2507_s10 + $0x38] sm:$0xff]  ;;  %v462_v14 = vld [vmem:[%s2507_s10 + $0x70] sm:$0xff]  ;;  %v456_v15 = vld [vmem:[%s2507_s10 + $0x40] sm:$0xff]  ;;  %663 = vmatpush.bf16.msra.mxu1 %v2145_v19  ;;  %2215 = vmatpush.bf16.msra.mxu2 %v2145_v19 }
  0x23   : > { %v463_v16 = vld [vmem:[%s2507_s10 + $0x78] sm:$0xff]  ;;  %v2201_v59 = vld [vmem:[#allocation3 + $0x1a4] sm:$0xf0]  ;;  %v2200_v62 = vld [vmem:[#allocation3 + $0x19c] sm:$0xf0]  ;;  %s2331_s10 = sshra.s32 %s1728_s27, 4  ;;  %s2332_s10 = int_to_ptr.hbm [resolvable:$true] %s2331_s10 }
  0x24   : > { %v2086_v61 = vor.u32 %v2201_v59, %v2085_v58  ;;  %v2111_v0 = vld [vmem:[#allocation3 + $0x1e0] sm:$0xf0]  ;;  %v2045_v18 = vld [vmem:[#allocation3 + $0x140] sm:$0xf]  ;;  %v2181_v47 = vld [vmem:[#allocation3 + $0x10c] sm:$0xf]  ;;  %p2338_p5 = scmp.lt.s32.totalorder %s2332_s10, %s2753_s7 }
  0x25   : > { %v2114_v4 = vor.u32 %v2204_v63, %v2111_v0  ;;  %v2079_v17 = vld [vmem:[#allocation3 + $0x1a0] sm:$0xf0]  ;;  %v2192_v19 = vld [vmem:[#allocation3 + $0x15c] sm:$0xf0]  ;;  %v1989_v54 = vld [vmem:[#allocation3 + $0xc8] sm:$0xf] }
  0x26   : > { %664 = vmatpush.bf16.msra.mxu1 %v2144_v20  ;;  %2216 = vmatpush.bf16.msra.mxu2 %v2144_v20  ;;  %v2015_v46 = vld [vmem:[#allocation3 + $0x120] sm:$0xf0]  ;;  %v1981_v51 = vld [vmem:[#allocation3 + $0xc0] sm:$0xf]  ;;  %v2173_v59 = vld [vmem:[#allocation3 + $0xcc] sm:$0xf] }
  0x27   : > { %1844 = vmatmul.msk.f32.gmra.mxu0 %vm467_vm0, %v449_v2  ;;  %1099 = vmatpush.bf16.msrb.mxu3 %v2114_v4  ;;  %v1983_v58 = vld [vmem:[#allocation3 + $0xe0] sm:$0xf0]  ;;  %v1949_v63 = vld [vmem:[#allocation3 + $0x80] sm:$0xf]  ;;  %v1957_v4 = vld [vmem:[#allocation3 + $0x88] sm:$0xf] }
  0x28   : > { %1853 = vmatmul.msk.f32.gmra.mxu3 %vm467_vm0, %v458_v6  ;;  %1149 = vmatpush.bf16.msrb.mxu0 %v2086_v61  ;;  %v2168_v0 = vld [vmem:[#allocation3 + $0x9c] sm:$0xf0]  ;;  %s2333_s12 = scalar_lea.hbm %s2332_s10, 8 }
  0x29   : > { %p2334_p1 = scmp.ne.s32.totalorder %s2332_s10, %s2333_s12  ;;  %p2339_p6 = scmp.lt.s32.totalorder %s2337_s18, %s2333_s12 }
  0x2a   : > { %1050 = vmatpush.bf16.msrb.mxu2 %v2110_v56  ;;  %1197 = vmatpush.bf16.msrb.mxu1 %v2122_v57  ;;  %v2172_v56 = vld [vmem:[#allocation3 + $0xc4] sm:$0xf] }
  0x2b   : > { %v1986_v61 = vor.u32 %v2172_v56, %v1983_v58  ;;  %p2335_p2 = pnand %p2334_p1, %p2484_p4  ;;  %p2340_p7 = por %p2339_p6, %p2338_p5 }
  0x2d   : > { %p2336_p3 = pneg %p2335_p2 }
  0x2f   : > { %1845 = vmatmul.msk.f32.gmra.mxu0 %vm467_vm0, %v450_v3  ;;  %v2078_v3 = vor.u32 %v2200_v62, %v2077_v60  ;;  %v1991_v60 = vld [vmem:[#allocation3 + $0xe8] sm:$0xf0]  ;;  %p2341_p9 = pnand %p2340_p7, %p2336_p3 }
  0x30   : > { %1854 = vmatmul.msk.f32.gmra.mxu3 %vm467_vm0, %v459_v8  ;;  %v1994_v62 = vor.u32 %v2173_v59, %v1991_v60  ;;  %v2093_v60 = vld [vmem:[#allocation3 + $0x190] sm:$0xf] }
  0x31   : > { %1051 = vmatpush.bf16.msrb.mxu2 %v2078_v3  ;;  %v1951_v3 = vld [vmem:[#allocation3 + $0xa0] sm:$0xf0] }
  0x37   : > { %1846 = vmatmul.msk.f32.gmra.mxu0 %vm467_vm0, %v451_v5 }
  0x38   : > { %1855 = vmatmul.msk.f32.gmra.mxu3 %vm467_vm0, %v460_v10 }
  0x3f   : > { %1847 = vmatmul.msk.f32.gmra.mxu0 %vm467_vm0, %v452_v7 }
  0x40   : > { %1856 = vmatmul.msk.f32.gmra.mxu3 %vm467_vm0, %v461_v12 }
  0x47   : > { %1848 = vmatmul.msk.f32.gmra.mxu0 %vm467_vm0, %v453_v9 }
  0x48   : > { %1857 = vmatmul.msk.f32.gmra.mxu3 %vm467_vm0, %v462_v14  ;;  %v2087_v14 = vld [vmem:[#allocation3 + $0x1a8] sm:$0xf0] }
  0x4f   : > { %1849 = vmatmul.msk.f32.gmra.mxu0 %vm467_vm0, %v454_v11 }
  0x50   : > { %1858 = vmatmul.msk.f32.gmra.mxu3 %vm467_vm0, %v463_v16 }
  0x57   : > { %1850 = vmatmul.msk.f32.gmra.mxu0 %vm467_vm0, %v455_v13  ;;  %v2197_v13 = vld [vmem:[#allocation3 + $0x18c] sm:$0xf] }
  0x58   : > { %v2090_v16 = vor.u32 %v2197_v13, %v2087_v14  ;;  %v2160_v13 = vld [vmem:[#allocation3 + $0x5c] sm:$0xf0] }
  0x5a   : > { %1198 = vmatpush.bf16.msrb.mxu1 %v2090_v16 }
  0x5f   : > { %1851 = vmatmul.msk.f32.gmra.mxu0 %vm467_vm0, %v456_v15  ;;  %v2196_v15 = vld [vmem:[#allocation3 + $0x184] sm:$0xf] }
  0x60   : > { %v2082_v20 = vor.u32 %v2196_v15, %v2079_v17 }
  0x62   : > { %1100 = vmatpush.bf16.msrb.mxu3 %v2082_v20 }
  0x9c   : > { %v533_v21 = vpop.f32.mrf.mxu0 }
  0x9d   : > { %v534_v23 = vadd.f32 %v2559_v22, %v533_v21  ;;  %v2046_v21 = vor.u32 %v2192_v19, %v2045_v18 }
  0x9f   : > { %v581_v26 = vmax.f32 %v534_v23, 0.0  ;;  %v2053_v23 = vld [vmem:[#allocation3 + $0x148] sm:$0xf]  ;;  %1052 = vmatpush.bf16.msrb.mxu2 %v2046_v21 }
  0xa3   : > { %v560_v43 = vpop.f32.mrf.mxu3 }
  0xa4   : > { %v536_v24 = vpop.f32.mrf.mxu0  ;;  %v561_v6 = vadd.f32 %v2559_v22, %v560_v43 }
  0xa5   : > { %v537_v25 = vadd.f32 %v2559_v22, %v536_v24  ;;  %v2193_v24 = vld [vmem:[#allocation3 + $0x164] sm:$0xf0] }
  0xa6   : > { %v590_v8 = vmax.f32 %v561_v6, 0.0 }
  0xa7   : > { %v582_v27 = vmax.f32 %v537_v25, 0.0  ;;  %v2188_v25 = vld [vmem:[#allocation3 + $0x144] sm:$0xf] }
  0xa9   : > { %v597_v28 = vpack.c.bf16 %v582_v27, %v581_v26  ;;  %v2054_v26 = vor.u32 %v2193_v24, %v2053_v23  ;;  %v2047_v27 = vld [vmem:[#allocation3 + $0x160] sm:$0xf0] }
  0xaa   : > { %v2156_v24 = vld [vmem:[#allocation3 + $0x44] sm:$0xf] }
  0xab   : > { %1875 = vmatmul.msk.bf16.vlgmr.msra.gmra.mxu1 %vm632_vm1, %v597_v28  ;;  %v2571_v50 = vpop.f32.mrf.mxu3  ;;  %v2189_v28 = vld [vmem:[#allocation3 + $0x14c] sm:$0xf]  ;;  %1150 = vmatpush.bf16.msrb.mxu0 %v2054_v26  ;;  %v1925_v26 = vld [vmem:[#allocation3 + $0x48] sm:$0xf] }
  0xac   : > { %v539_v29 = vpop.f32.mrf.mxu0 }
  0xad   : > { %v540_v30 = vadd.f32 %v2559_v22, %v539_v29  ;;  %v2055_v29 = vld [vmem:[#allocation3 + $0x168] sm:$0xf0] }
  0xaf   : > { %v583_v33 = vmax.f32 %v540_v30, 0.0  ;;  %v2050_v30 = vor.u32 %v2188_v25, %v2047_v27  ;;  %v1919_v25 = vld [vmem:[#allocation3 + $0x60] sm:$0xf0] }
  0xb0   : > { %v1922_v27 = vor.u32 %v2156_v24, %v1919_v25  ;;  %v2195_v24 = vld [vmem:[#allocation3 + $0x174] sm:$0xf0] }
  0xb1   : > { %1101 = vmatpush.bf16.msrb.mxu3 %v2050_v30  ;;  %v1927_v30 = vld [vmem:[#allocation3 + $0x68] sm:$0xf0] }
  0xb3   : > { %v566_v10 = vpop.f32.mrf.mxu3 }
  0xb4   : > { %v542_v31 = vpop.f32.mrf.mxu0 }
  0xb5   : > { %v543_v32 = vadd.f32 %v2559_v22, %v542_v31  ;;  %v2058_v31 = vor.u32 %v2189_v28, %v2055_v29  ;;  %v2161_v28 = vld [vmem:[#allocation3 + $0x64] sm:$0xf0]  ;;  %v2157_v29 = vld [vmem:[#allocation3 + $0x4c] sm:$0xf] }
  0xb7   : > { %v584_v34 = vmax.f32 %v543_v32, 0.0  ;;  %v2013_v32 = vld [vmem:[#allocation3 + $0x100] sm:$0xf]  ;;  %1199 = vmatpush.bf16.msrb.mxu1 %v2058_v31 }
  0xb9   : > { %v598_v35 = vpack.c.bf16 %v584_v34, %v583_v33  ;;  %v2184_v33 = vld [vmem:[#allocation3 + $0x11c] sm:$0xf0]  ;;  %v2021_v34 = vld [vmem:[#allocation3 + $0x108] sm:$0xf] }
  0xbb   : > { %1876 = vmatmul.msk.bf16.gmra.mxu1 %vm632_vm1, %v598_v35  ;;  %v569_v35 = vpop.f32.mrf.mxu3 }
  0xbc   : > { %v545_v36 = vpop.f32.mrf.mxu0  ;;  %v570_v6 = vadd.f32 %v2559_v22, %v569_v35  ;;  %v1885_v35 = vld [vmem:[#allocation3] sm:$0xf] }
  0xbd   : > { %v546_v37 = vadd.f32 %v2559_v22, %v545_v36  ;;  %v2014_v36 = vor.u32 %v2184_v33, %v2013_v32  ;;  %v1926_v33 = vor.u32 %v2161_v28, %v1925_v26  ;;  %v2191_v26 = vld [vmem:[#allocation3 + $0x15c] sm:$0xf] }
  0xbe   : > { %v593_v17 = vmax.f32 %v570_v6, 0.0  ;;  %v2199_v6 = vld [vmem:[#allocation3 + $0x19c] sm:$0xf] }
  0xbf   : > { %v585_v40 = vmax.f32 %v546_v37, 0.0  ;;  %v2185_v37 = vld [vmem:[#allocation3 + $0x124] sm:$0xf0]  ;;  %1053 = vmatpush.bf16.msrb.mxu2 %v2014_v36  ;;  %v2152_v36 = vld [vmem:[#allocation3 + $0x1c] sm:$0xf0] }
  0xc4   : > { %v548_v38 = vpop.f32.mrf.mxu0 }
  0xc5   : > { %v549_v39 = vadd.f32 %v2559_v22, %v548_v38  ;;  %v564_v38 = vadd.f32 %v2559_v22, %v2571_v50  ;;  %v2176_v50 = vld [vmem:[#allocation3 + $0xdc] sm:$0xf0] }
  0xc6   : > { %v1982_v53 = vor.u32 %v2176_v50, %v1981_v51  ;;  %v2127_v50 = vld [vmem:[#allocation3 + $0x1f0] sm:$0xf0] }
  0xc7   : > { %v586_v41 = vmax.f32 %v549_v39, 0.0  ;;  %v567_v39 = vadd.f32 %v2559_v22, %v566_v10  ;;  %v1959_v10 = vld [vmem:[#allocation3 + $0xa8] sm:$0xf0] }
  0xc8   : > { %1054 = vmatpush.bf16.msrb.mxu2 %v1982_v53  ;;  %v2133_v53 = vld [vmem:[#allocation3 + $0x1d8] sm:$0xf] }
  0xc9   : > { %v599_v42 = vpack.c.bf16 %v586_v41, %v585_v40  ;;  %v2022_v40 = vor.u32 %v2185_v37, %v2021_v34  ;;  %v591_v41 = vmax.f32 %v564_v38, 0.0  ;;  %v1930_v34 = vor.u32 %v2157_v29, %v1927_v30 }
  0xca   : > { %v1886_v37 = vor.u32 %v2152_v36, %v1885_v35  ;;  %v2029_v36 = vld [vmem:[#allocation3 + $0x110] sm:$0xf] }
  0xcb   : > { %1877 = vmatmul.msk.bf16.gmra.mxu1 %vm632_vm1, %v599_v42  ;;  %1151 = vmatpush.bf16.msrb.mxu0 %v2022_v40  ;;  %v592_v42 = vmax.f32 %v567_v39, 0.0  ;;  %v1887_v39 = vld [vmem:[#allocation3 + $0x20] sm:$0xf0]  ;;  %v1893_v40 = vld [vmem:[#allocation3 + $0x8] sm:$0xf] }
  0xcc   : > { %v551_v44 = vpop.f32.mrf.mxu0 }
  0xcd   : > { %v552_v45 = vadd.f32 %v2559_v22, %v551_v44  ;;  %v602_v43 = vpack.c.bf16 %v592_v42, %v591_v41  ;;  %v572_v44 = vpop.f32.mrf.mxu3  ;;  %v2153_v42 = vld [vmem:[#allocation3 + $0x24] sm:$0xf0] }
  0xcf   : > { %v587_v1 = vmax.f32 %v552_v45, 0.0  ;;  %v2180_v45 = vld [vmem:[#allocation3 + $0x104] sm:$0xf] }
  0xd0   : > { %v2018_v48 = vor.u32 %v2180_v45, %v2015_v46  ;;  %v1894_v45 = vor.u32 %v2153_v42, %v1893_v40  ;;  %v2037_v40 = vld [vmem:[#allocation3 + $0x118] sm:$0xf] }
  0xd2   : > { %1102 = vmatpush.bf16.msrb.mxu3 %v2018_v48  ;;  %v2210_v48 = vld [vmem:[#allocation3 + $0x1ec] sm:$0xf0] }
  0xd4   : > { %v554_v49 = vpop.f32.mrf.mxu0 }
  0xd5   : > { %v555_v55 = vadd.f32 %v2559_v22, %v554_v49  ;;  %v2023_v49 = vld [vmem:[#allocation3 + $0x128] sm:$0xf0]  ;;  %v575_v16 = vpop.f32.mrf.mxu3 }
  0xd6   : > { %v2026_v52 = vor.u32 %v2181_v47, %v2023_v49  ;;  %1103 = vmatpush.bf16.msrb.mxu3 %v1986_v61  ;;  %v576_v21 = vadd.f32 %v2559_v22, %v575_v16  ;;  %v2125_v47 = vld [vmem:[#allocation3 + $0x1d0] sm:$0xf]  ;;  %v2206_v49 = vld [vmem:[#allocation3 + $0x1d4] sm:$0xf] }
  0xd7   : > { %v588_v2 = vmax.f32 %v555_v55, 0.0  ;;  %v2177_v55 = vld [vmem:[#allocation3 + $0xe4] sm:$0xf0]  ;;  %v2126_v51 = vor.u32 %v2210_v48, %v2125_v47  ;;  %v2202_v61 = vld [vmem:[#allocation3 + $0x1ac] sm:$0xf0] }
  0xd8   : > { %v1990_v57 = vor.u32 %v2177_v55, %v1989_v54  ;;  %1200 = vmatpush.bf16.msrb.mxu1 %v2026_v52  ;;  %v595_v31 = vmax.f32 %v576_v21, 0.0  ;;  %v2130_v52 = vor.u32 %v2206_v49, %v2127_v50  ;;  %v2211_v54 = vld [vmem:[#allocation3 + $0x1f4] sm:$0xf0]  ;;  %v2207_v55 = vld [vmem:[#allocation3 + $0x1dc] sm:$0xf] }
  0xd9   : > { %v600_v5 = vpack.c.bf16 %v588_v2, %v587_v1  ;;  %v2164_v1 = vld [vmem:[#allocation3 + $0x84] sm:$0xf]  ;;  %v1950_v2 = vor.u32 %v2168_v0, %v1949_v63  ;;  %v2134_v56 = vor.u32 %v2211_v54, %v2133_v53  ;;  %v2094_v63 = vor.u32 %v2202_v61, %v2093_v60  ;;  %v2095_v0 = vld [vmem:[#allocation3 + $0x1b0] sm:$0xf0]  ;;  %v2061_v16 = vld [vmem:[#allocation3 + $0x150] sm:$0xf] }
  0xda   : > { %1152 = vmatpush.bf16.msrb.mxu0 %v1990_v57  ;;  %v2135_v57 = vld [vmem:[#allocation3 + $0x1f8] sm:$0xf0]  ;;  %v1997_v54 = vld [vmem:[#allocation3 + $0xd0] sm:$0xf]  ;;  %v2179_v60 = vld [vmem:[#allocation3 + $0xf4] sm:$0xf0] }
  0xdb   : > { %1878 = vmatmul.msk.bf16.gmra.mxu1 %vm632_vm1, %v600_v5  ;;  %v2169_v5 = vld [vmem:[#allocation3 + $0xa4] sm:$0xf0]  ;;  %1055 = vmatpush.bf16.msrb.mxu2 %v1950_v2  ;;  %v2138_v58 = vor.u32 %v2207_v55, %v2135_v57  ;;  %v2591_v2 = vld [vmem:[%s2750_s4] ss:$0 sm:$0xff]  ;;  %v2178_v55 = vld [vmem:[#allocation3 + $0xec] sm:$0xf0] }
  0xdc   : > { %v557_v7 = vpop.f32.mrf.mxu0  ;;  %1201 = vmatpush.bf16.msrb.mxu1 %v1994_v62  ;;  %v2198_v62 = vld [vmem:[#allocation3 + $0x194] sm:$0xf]  ;;  %v1998_v57 = vor.u32 %v2178_v55, %v1997_v54 }
  0xdd   : > { %v558_v9 = vadd.f32 %v2559_v22, %v557_v7  ;;  %v573_v7 = vadd.f32 %v2559_v22, %v572_v44  ;;  %v578_v20 = vpop.f32.mrf.mxu3  ;;  %v1895_v44 = vld [vmem:[#allocation3 + $0x28] sm:$0xf0]  ;;  %v1903_v55 = vld [vmem:[#allocation3 + $0x30] sm:$0xf0] }
  0xde   : > { %v579_v23 = vadd.f32 %v2559_v22, %v578_v20  ;;  %v2148_v22 = vld [vmem:[#allocation3 + $0x4] sm:$0xf]  ;;  %v2063_v20 = vld [vmem:[#allocation3 + $0x170] sm:$0xf0] }
  0xdf   : > { %v589_v11 = vmax.f32 %v558_v9, 0.0  ;;  %v2165_v9 = vld [vmem:[#allocation3 + $0x8c] sm:$0xf]  ;;  %v594_v18 = vmax.f32 %v573_v7, 0.0  ;;  %v1890_v41 = vor.u32 %v2148_v22, %v1887_v39  ;;  %v2103_v7 = vld [vmem:[#allocation3 + $0x1b8] sm:$0xf0] }
  0xe0   : > { %v1962_v14 = vor.u32 %v2165_v9, %v1959_v10  ;;  %v596_v32 = vmax.f32 %v579_v23, 0.0  ;;  %v2069_v23 = vld [vmem:[#allocation3 + $0x158] sm:$0xf]  ;;  %v2031_v39 = vld [vmem:[#allocation3 + $0x130] sm:$0xf0] }
  0xe1   : > { %v601_v12 = vpack.c.bf16 %v590_v8, %v589_v11  ;;  %v1958_v8 = vor.u32 %v2169_v5, %v1957_v4  ;;  %v1917_v11 = vld [vmem:[#allocation3 + $0x40] sm:$0xf]  ;;  %v603_v19 = vpack.c.bf16 %v594_v18, %v593_v17  ;;  %v2203_v4 = vld [vmem:[#allocation3 + $0x1b4] sm:$0xf0]  ;;  %v2194_v17 = vld [vmem:[#allocation3 + $0x16c] sm:$0xf0]  ;;  %v2070_v25 = vor.u32 %v2195_v24, %v2069_v23 }
  0xe2   : > { %v1918_v15 = vor.u32 %v2160_v13, %v1917_v11  ;;  %1202 = vmatpush.bf16.msrb.mxu1 %v1962_v14  ;;  %v604_v38 = vpack.c.bf16 %v596_v32, %v595_v31  ;;  %v2190_v18 = vld [vmem:[#allocation3 + $0x154] sm:$0xf] }
  0xe3   : > { %1879 = vmatmul.msk.bf16.vlgmr.msra.gmra.mxu2 %vm632_vm1, %v601_v12  ;;  %v1954_v12 = vor.u32 %v2164_v1, %v1951_v3  ;;  %1153 = vmatpush.bf16.msrb.mxu0 %v1958_v8  ;;  %v2098_v1 = vor.u32 %v2198_v62, %v2095_v0  ;;  %v2101_v3 = vld [vmem:[#allocation3 + $0x198] sm:$0xf]  ;;  %v2106_v8 = vor.u32 %v2199_v6, %v2103_v7  ;;  %v2007_v0 = vld [vmem:[#allocation3 + $0xf8] sm:$0xf0] }
  0xe4   : > { %1056 = vmatpush.bf16.msrb.mxu2 %v1918_v15  ;;  %v2102_v5 = vor.u32 %v2203_v4, %v2101_v3  ;;  %v2066_v21 = vor.u32 %v2190_v18, %v2063_v20  ;;  %v2171_v18 = vld [vmem:[#allocation3 + $0xb4] sm:$0xf0]  ;;  %v1975_v20 = vld [vmem:[#allocation3 + $0xb8] sm:$0xf0] }
  0xe5   : > { %1104 = vmatpush.bf16.msrb.mxu3 %v1954_v12 }
  0xe6   : > { %1203 = vmatpush.bf16.msrb.mxu1 %v1930_v34 }
  0xe7   : > { %1154 = vmatpush.bf16.msrb.mxu0 %v1926_v33 }
  0xe8   : > { %1057 = vmatpush.bf16.msrb.mxu2 %v1886_v37  ;;  %v2186_v37 = vld [vmem:[#allocation3 + $0x12c] sm:$0xf0] }
  0xe9   : > { %1105 = vmatpush.bf16.msrb.mxu3 %v1922_v27  ;;  %v2071_v27 = vld [vmem:[#allocation3 + $0x178] sm:$0xf0]  ;;  %v2030_v22 = vor.u32 %v2186_v37, %v2029_v36  ;;  %v1935_v36 = vld [vmem:[#allocation3 + $0x70] sm:$0xf0]  ;;  %v1941_v37 = vld [vmem:[#allocation3 + $0x58] sm:$0xf] }
  0xea   : > { %v2074_v28 = vor.u32 %v2191_v26, %v2071_v27 }
  0xeb   : > { %1155 = vmatpush.bf16.msrb.mxu0 %v1894_v45  ;;  %v2039_v45 = vld [vmem:[#allocation3 + $0x138] sm:$0xf0] }
  0xec   : > { %1246 = vmatpush.bf16.msra.mxu2 %v2126_v51 }
  0xed   : > { %1106 = vmatpush.bf16.msrb.mxu3 %v1890_v41  ;;  %v2187_v41 = vld [vmem:[#allocation3 + $0x134] sm:$0xf0] }
  0xef   : > { %1344 = vmatpush.bf16.msra.mxu0 %v2134_v56  ;;  %v2174_v56 = vld [vmem:[#allocation3 + $0xd4] sm:$0xf] }
  0xf0   : > { %1247 = vmatpush.bf16.msra.mxu2 %v2094_v63  ;;  %v2175_v63 = vld [vmem:[#allocation3 + $0xdc] sm:$0xf] }
  0xf1   : > { %1295 = vmatpush.bf16.msra.mxu3 %v2130_v52 }
  0xf3   : > { %1880 = vmatmul.msk.bf16.gmra.mxu2 %vm632_vm1, %v602_v43  ;;  %v2149_v43 = vld [vmem:[#allocation3 + $0xc] sm:$0xf]  ;;  %1345 = vmatpush.bf16.msra.mxu0 %v2102_v5 }
  0xf4   : > { %v1898_v46 = vor.u32 %v2149_v43, %v1895_v44  ;;  %v2038_v43 = vor.u32 %v2187_v41, %v2037_v40  ;;  %v2183_v44 = vld [vmem:[#allocation3 + $0x11c] sm:$0xf] }
  0xf5   : > { %1296 = vmatpush.bf16.msra.mxu3 %v2098_v1  ;;  %v2010_v1 = vor.u32 %v2175_v63, %v2007_v0  ;;  %v1943_v40 = vld [vmem:[#allocation3 + $0x78] sm:$0xf0] }
  0xf6   : > { %1204 = vmatpush.bf16.msrb.mxu1 %v1898_v46  ;;  %v2042_v46 = vor.u32 %v2183_v44, %v2039_v45 }
  0xf7   : > { %1346 = vmatpush.bf16.msra.mxu0 %v2070_v25 }
  0xf9   : > { %1297 = vmatpush.bf16.msra.mxu3 %v2066_v21 }
  0xfa   : > { %1393 = vmatpush.bf16.msra.mxu1 %v2138_v58  ;;  %v1999_v58 = vld [vmem:[#allocation3 + $0xf0] sm:$0xf0] }
  0xfb   : > { %1347 = vmatpush.bf16.msra.mxu0 %v2038_v43  ;;  %v2002_v61 = vor.u32 %v2174_v56, %v1999_v58  ;;  %v1909_v56 = vld [vmem:[#allocation3 + $0x18] sm:$0xf] }
  0xfc   : > { %v2155_v58 = vld [vmem:[#allocation3 + $0x34] sm:$0xf0] }
  0xfe   : > { %1394 = vmatpush.bf16.msra.mxu1 %v2106_v8 }
 0x102   : > { %1395 = vmatpush.bf16.msra.mxu1 %v2074_v28 }
 0x103   : > { %1881 = vmatmul.msk.bf16.gmra.mxu2 %vm632_vm1, %v603_v19  ;;  %v2062_v19 = vor.u32 %v2194_v17, %v2061_v16  ;;  %v1973_v16 = vld [vmem:[#allocation3 + $0x98] sm:$0xf] }
 0x104   : > { %v1974_v21 = vor.u32 %v2171_v18, %v1973_v16 }
 0x105   : > { %1248 = vmatpush.bf16.msra.mxu2 %v2062_v19  ;;  %v2167_v19 = vld [vmem:[#allocation3 + $0x9c] sm:$0xf] }
 0x106   : > { %1396 = vmatpush.bf16.msra.mxu1 %v2042_v46  ;;  %v1978_v23 = vor.u32 %v2167_v19, %v1975_v20 }
 0x109   : > { %1249 = vmatpush.bf16.msra.mxu2 %v2030_v22  ;;  %v2163_v22 = vld [vmem:[#allocation3 + $0x74] sm:$0xf0] }
 0x10a   : > { %1397 = vmatpush.bf16.msra.mxu1 %v2010_v1  ;;  %v1942_v41 = vor.u32 %v2163_v22, %v1941_v37 }
 0x10d   : > { %1250 = vmatpush.bf16.msra.mxu2 %v1998_v57 }
 0x10e   : > { %1398 = vmatpush.bf16.msra.mxu1 %v1978_v23 }
 0x113   : > { %1882 = vmatmul.msk.bf16.gmra.mxu2 %vm632_vm1, %v604_v38  ;;  %v2182_v38 = vld [vmem:[#allocation3 + $0x114] sm:$0xf] }
 0x114   : > { %v2034_v42 = vor.u32 %v2182_v38, %v2031_v39  ;;  %v2159_v39 = vld [vmem:[#allocation3 + $0x5c] sm:$0xf] }
 0x116   : > { %1298 = vmatpush.bf16.msra.mxu3 %v2034_v42  ;;  %v1946_v42 = vor.u32 %v2159_v39, %v1943_v40 }
 0x118   : > { %1399 = vmatpush.bf16.msra.mxu1 %v1946_v42 }
 0x11a   : > { %1299 = vmatpush.bf16.msra.mxu3 %v2002_v61  ;;  %v1910_v61 = vor.u32 %v2155_v58, %v1909_v56 }
 0x128   : > { %v666_v59 = vpop.f32.mrf.mxu1 }
 0x129   : > { %v667_v9 = vadd.f32 %v2591_v2, %v666_v59  ;;  %v2005_v59 = vld [vmem:[#allocation3 + $0xd8] sm:$0xf] }
 0x12a   : > { %v2006_v62 = vor.u32 %v2179_v60, %v2005_v59  ;;  %v2151_v59 = vld [vmem:[#allocation3 + $0x1c] sm:$0xf] }
 0x12b   : > { %v706_v12 = vmax.f32 %v667_v9, 0.0  ;;  %v1911_v60 = vld [vmem:[#allocation3 + $0x38] sm:$0xf0] }
 0x12c   : > { %1348 = vmatpush.bf16.msra.mxu0 %v2006_v62  ;;  %v1914_v62 = vor.u32 %v2151_v59, %v1911_v60 }
 0x12e   : > { %1400 = vmatpush.bf16.msra.mxu1 %v1914_v62 }
 0x130   : > { %v668_v10 = vpop.f32.mrf.mxu1  ;;  %1349 = vmatpush.bf16.msra.mxu0 %v1974_v21 }
 0x131   : > { %v669_v11 = vadd.f32 %v2591_v2, %v668_v10  ;;  %v1965_v10 = vld [vmem:[#allocation3 + $0x90] sm:$0xf] }
 0x133   : > { %v707_v13 = vmax.f32 %v669_v11, 0.0  ;;  %v2170_v11 = vld [vmem:[#allocation3 + $0xac] sm:$0xf0] }
 0x134   : > { %1350 = vmatpush.bf16.msra.mxu0 %v1942_v41 }
 0x135   : > { %v2595_v14 = vpack.c.bf16 %v707_v13, %v706_v12  ;;  %v1966_v12 = vor.u32 %v2170_v11, %v1965_v10  ;;  %v2166_v13 = vld [vmem:[#allocation3 + $0x94] sm:$0xf] }
 0x137   : > { %1058 = vmatmul.bf16.vlgmr.msrb.gmra.mxu2 %v2595_v14  ;;  %1107 = vmatmul.bf16.vlgmr.msrb.gmra.mxu3 %v2595_v14 }
 0x138   : > { %1156 = vmatmul.bf16.vlgmr.msrb.gmra.mxu0 %v2595_v14  ;;  %1205 = vmatmul.bf16.vlgmr.msrb.gmra.mxu1 %v2595_v14  ;;  %v671_v15 = vpop.f32.mrf.mxu1 }
 0x139   : > { %v672_v29 = vadd.f32 %v2591_v2, %v671_v15  ;;  %v1967_v15 = vld [vmem:[#allocation3 + $0xb0] sm:$0xf0]  ;;  %1251 = vmatpush.bf16.msra.mxu2 %v1966_v12  ;;  %1351 = vmatpush.bf16.msra.mxu0 %v1910_v61 }
 0x13a   : > { %v1970_v17 = vor.u32 %v2166_v13, %v1967_v15 }
 0x13b   : > { %v708_v32 = vmax.f32 %v672_v29, 0.0 }
 0x13c   : > { %1300 = vmatpush.bf16.msra.mxu3 %v1970_v17 }
 0x140   : > { %v673_v30 = vpop.f32.mrf.mxu1 }
 0x141   : > { %v674_v31 = vadd.f32 %v2591_v2, %v673_v30 }
 0x143   : > { %v709_v33 = vmax.f32 %v674_v31, 0.0  ;;  %v1933_v31 = vld [vmem:[#allocation3 + $0x50] sm:$0xf] }
 0x145   : > { %v2603_v34 = vpack.c.bf16 %v709_v33, %v708_v32  ;;  %v2162_v32 = vld [vmem:[#allocation3 + $0x6c] sm:$0xf0] }
 0x146   : > { %v1934_v33 = vor.u32 %v2162_v32, %v1933_v31 }
 0x147   : > { %1063 = vmatmul.bf16.gmra.mxu2 %v2603_v34  ;;  %1112 = vmatmul.bf16.gmra.mxu3 %v2603_v34 }
 0x148   : > { %1161 = vmatmul.bf16.gmra.mxu0 %v2603_v34  ;;  %1210 = vmatmul.bf16.gmra.mxu1 %v2603_v34  ;;  %v676_v35 = vpop.f32.mrf.mxu1 }
 0x149   : > { %v677_v47 = vadd.f32 %v2591_v2, %v676_v35  ;;  %v2158_v35 = vld [vmem:[#allocation3 + $0x54] sm:$0xf]  ;;  %1252 = vmatpush.bf16.msra.mxu2 %v1934_v33 }
 0x14a   : > { %v1938_v38 = vor.u32 %v2158_v35, %v1935_v36 }
 0x14b   : > { %v710_v51 = vmax.f32 %v677_v47, 0.0 }
 0x14c   : > { %1301 = vmatpush.bf16.msra.mxu3 %v1938_v38 }
 0x150   : > { %v678_v48 = vpop.f32.mrf.mxu1 }
 0x151   : > { %v679_v49 = vadd.f32 %v2591_v2, %v678_v48 }
 0x153   : > { %v711_v50 = vmax.f32 %v679_v49, 0.0 }
 0x155   : > { %v2611_v52 = vpack.c.bf16 %v711_v50, %v710_v51  ;;  %v1901_v51 = vld [vmem:[#allocation3 + $0x10] sm:$0xf] }
 0x156   : > { %v2154_v50 = vld [vmem:[#allocation3 + $0x2c] sm:$0xf0] }
 0x157   : > { %1068 = vmatmul.bf16.gmra.mxu2 %v2611_v52  ;;  %1117 = vmatmul.bf16.gmra.mxu3 %v2611_v52  ;;  %v1902_v54 = vor.u32 %v2154_v50, %v1901_v51 }
 0x158   : > { %1166 = vmatmul.bf16.gmra.mxu0 %v2611_v52  ;;  %1215 = vmatmul.bf16.gmra.mxu1 %v2611_v52  ;;  %v681_v53 = vpop.f32.mrf.mxu1 }
 0x159   : > { %v682_v3 = vadd.f32 %v2591_v2, %v681_v53  ;;  %v2150_v53 = vld [vmem:[#allocation3 + $0x14] sm:$0xf]  ;;  %1253 = vmatpush.bf16.msra.mxu2 %v1902_v54 }
 0x15a   : > { %v1906_v57 = vor.u32 %v2150_v53, %v1903_v55 }
 0x15b   : > { %v712_v6 = vmax.f32 %v682_v3, 0.0 }
 0x15c   : > { %1302 = vmatpush.bf16.msra.mxu3 %v1906_v57 }
 0x160   : > { %v683_v4 = vpop.f32.mrf.mxu1 }
 0x161   : > { %v684_v5 = vadd.f32 %v2591_v2, %v683_v4 }
 0x163   : > { %v713_v7 = vmax.f32 %v684_v5, 0.0 }
 0x165   : > { %v2619_v8 = vpack.c.bf16 %v713_v7, %v712_v6 }
 0x166   : > { %v686_v9 = vpop.f32.mrf.mxu2 }
 0x167   : > { %1073 = vmatmul.bf16.gmra.mxu2 %v2619_v8  ;;  %1122 = vmatmul.bf16.gmra.mxu3 %v2619_v8  ;;  %v687_v25 = vadd.f32 %v2591_v2, %v686_v9 }
 0x168   : > { %1171 = vmatmul.bf16.gmra.mxu0 %v2619_v8  ;;  %1220 = vmatmul.bf16.gmra.mxu1 %v2619_v8 }
 0x169   : > { %v714_v28 = vmax.f32 %v687_v25, 0.0 }
 0x16e   : > { %v688_v24 = vpop.f32.mrf.mxu2 }
 0x16f   : > { %v689_v26 = vadd.f32 %v2591_v2, %v688_v24 }
 0x171   : > { %v715_v27 = vmax.f32 %v689_v26, 0.0 }
 0x173   : > { %v2627_v29 = vpack.c.bf16 %v715_v27, %v714_v28 }
 0x176   : > { %v691_v30 = vpop.f32.mrf.mxu2 }
 0x177   : > { %1078 = vmatmul.bf16.gmra.mxu2 %v2627_v29  ;;  %1127 = vmatmul.bf16.gmra.mxu3 %v2627_v29  ;;  %v692_v44 = vadd.f32 %v2591_v2, %v691_v30 }
 0x178   : > { %1176 = vmatmul.bf16.gmra.mxu0 %v2627_v29  ;;  %1225 = vmatmul.bf16.gmra.mxu1 %v2627_v29 }
 0x179   : > { %v716_v47 = vmax.f32 %v692_v44, 0.0 }
 0x17e   : > { %v693_v43 = vpop.f32.mrf.mxu2 }
 0x17f   : > { %v694_v45 = vadd.f32 %v2591_v2, %v693_v43 }
 0x181   : > { %v717_v46 = vmax.f32 %v694_v45, 0.0 }
 0x183   : > { %v2635_v48 = vpack.c.bf16 %v717_v46, %v716_v47 }
 0x186   : > { %v696_v49 = vpop.f32.mrf.mxu2 }
 0x187   : > { %1083 = vmatmul.bf16.gmra.mxu2 %v2635_v48  ;;  %1132 = vmatmul.bf16.gmra.mxu3 %v2635_v48  ;;  %v697_v0 = vadd.f32 %v2591_v2, %v696_v49 }
 0x188   : > { %1181 = vmatmul.bf16.gmra.mxu0 %v2635_v48  ;;  %1230 = vmatmul.bf16.gmra.mxu1 %v2635_v48 }
 0x189   : > { %v718_v4 = vmax.f32 %v697_v0, 0.0 }
 0x18e   : > { %v698_v63 = vpop.f32.mrf.mxu2 }
 0x18f   : > { %v699_v1 = vadd.f32 %v2591_v2, %v698_v63 }
 0x191   : > { %v719_v3 = vmax.f32 %v699_v1, 0.0 }
 0x193   : > { %v2643_v5 = vpack.c.bf16 %v719_v3, %v718_v4 }
 0x196   : > { %v701_v6 = vpop.f32.mrf.mxu2 }
 0x197   : > { %1088 = vmatmul.bf16.gmra.mxu2 %v2643_v5  ;;  %1137 = vmatmul.bf16.gmra.mxu3 %v2643_v5  ;;  %v702_v9 = vadd.f32 %v2591_v2, %v701_v6 }
 0x198   : > { %1186 = vmatmul.bf16.gmra.mxu0 %v2643_v5  ;;  %1235 = vmatmul.bf16.gmra.mxu1 %v2643_v5 }
 0x199   : > { %v720_v12 = vmax.f32 %v702_v9, 0.0 }
 0x19e   : > { %v703_v7 = vpop.f32.mrf.mxu2 }
 0x19f   : > { %v704_v10 = vadd.f32 %v2591_v2, %v703_v7 }
 0x1a1   : > { %v721_v11 = vmax.f32 %v704_v10, 0.0 }
 0x1a3   : > { %v2651_v13 = vpack.c.bf16 %v721_v11, %v720_v12 }
 0x1a7   : > { %1093 = vmatmul.bf16.gmra.mxu2 %v2651_v13  ;;  %1142 = vmatmul.bf16.gmra.mxu3 %v2651_v13 }
 0x1a8   : > { %1191 = vmatmul.bf16.gmra.mxu0 %v2651_v13  ;;  %1240 = vmatmul.bf16.gmra.mxu1 %v2651_v13 }
 0x1b5   : > { %v1157_v15 = vpop.f32.mrf.mxu0  ;;  %v1206_v16 = vpop.f32.mrf.mxu1 }
 0x1b7   : > { %1254 = vmatmul.bf16.vlgmr.msra.gmra.mxu2 %v2595_v14  ;;  %1303 = vmatmul.bf16.vlgmr.msra.gmra.mxu3 %v2595_v14 }
 0x1b8   : > { %1352 = vmatmul.bf16.vlgmr.msra.gmra.mxu0 %v2595_v14  ;;  %1401 = vmatmul.bf16.vlgmr.msra.gmra.mxu1 %v2595_v14 }
 0x1ba   : > { %v1059_v2 = vpop.f32.mrf.mxu2  ;;  %v1108_v17 = vpop.f32.mrf.mxu3 }
 0x1bd   : > { %v1159_v18 = vpop.f32.mrf.mxu0  ;;  %v1208_v19 = vpop.f32.mrf.mxu1 }
 0x1be   : > { %v1480_v20 = vmax.f32 %v1157_v15, %v1159_v18  ;;  %v1495_v21 = vmax.f32 %v1206_v16, %v1208_v19 }
 0x1c2   : > { %v1061_v23 = vpop.f32.mrf.mxu2  ;;  %v1110_v24 = vpop.f32.mrf.mxu3 }
 0x1c3   : > { %v1450_v25 = vmax.f32 %v1059_v2, %v1061_v23  ;;  %v1465_v26 = vmax.f32 %v1108_v17, %v1110_v24 }
 0x1c5   : > { %v1162_v27 = vpop.f32.mrf.mxu0  ;;  %v1211_v28 = vpop.f32.mrf.mxu1 }
 0x1c6   : > { %v1481_v30 = vmax.f32 %v1480_v20, %v1162_v27  ;;  %v1496_v31 = vmax.f32 %v1495_v21, %v1211_v28 }
 0x1c7   : > { %1259 = vmatmul.bf16.gmra.mxu2 %v2603_v34  ;;  %1308 = vmatmul.bf16.gmra.mxu3 %v2603_v34 }
 0x1c8   : > { %1357 = vmatmul.bf16.gmra.mxu0 %v2603_v34  ;;  %1406 = vmatmul.bf16.gmra.mxu1 %v2603_v34 }
 0x1ca   : > { %v1064_v14 = vpop.f32.mrf.mxu2  ;;  %v1113_v32 = vpop.f32.mrf.mxu3 }
 0x1cb   : > { %v1451_v33 = vmax.f32 %v1450_v25, %v1064_v14  ;;  %v1466_v35 = vmax.f32 %v1465_v26, %v1113_v32 }
 0x1cd   : > { %v1164_v36 = vpop.f32.mrf.mxu0  ;;  %v1213_v37 = vpop.f32.mrf.mxu1 }
 0x1ce   : > { %v1482_v38 = vmax.f32 %v1481_v30, %v1164_v36  ;;  %v1497_v22 = vmax.f32 %v1496_v31, %v1213_v37 }
 0x1d2   : > { %v1066_v39 = vpop.f32.mrf.mxu2  ;;  %v1115_v40 = vpop.f32.mrf.mxu3 }
 0x1d3   : > { %v1452_v41 = vmax.f32 %v1451_v33, %v1066_v39  ;;  %v1467_v42 = vmax.f32 %v1466_v35, %v1115_v40 }
 0x1d5   : > { %v1167_v43 = vpop.f32.mrf.mxu0  ;;  %v1216_v44 = vpop.f32.mrf.mxu1 }
 0x1d6   : > { %v1483_v45 = vmax.f32 %v1482_v38, %v1167_v43  ;;  %v1498_v46 = vmax.f32 %v1497_v22, %v1216_v44 }
 0x1d7   : > { %1264 = vmatmul.bf16.gmra.mxu2 %v2611_v52  ;;  %1313 = vmatmul.bf16.gmra.mxu3 %v2611_v52 }
 0x1d8   : > { %1362 = vmatmul.bf16.gmra.mxu0 %v2611_v52  ;;  %1411 = vmatmul.bf16.gmra.mxu1 %v2611_v52 }
 0x1da   : > { %v1069_v34 = vpop.f32.mrf.mxu2  ;;  %v1118_v47 = vpop.f32.mrf.mxu3 }
 0x1db   : > { %v1453_v49 = vmax.f32 %v1452_v41, %v1069_v34  ;;  %v1468_v51 = vmax.f32 %v1467_v42, %v1118_v47 }
 0x1dd   : > { %v1169_v50 = vpop.f32.mrf.mxu0  ;;  %v1218_v53 = vpop.f32.mrf.mxu1 }
 0x1de   : > { %v1484_v54 = vmax.f32 %v1483_v45, %v1169_v50  ;;  %v1499_v55 = vmax.f32 %v1498_v46, %v1218_v53 }
 0x1e2   : > { %v1071_v56 = vpop.f32.mrf.mxu2  ;;  %v1120_v57 = vpop.f32.mrf.mxu3 }
 0x1e3   : > { %v1454_v58 = vmax.f32 %v1453_v49, %v1071_v56  ;;  %v1469_v59 = vmax.f32 %v1468_v51, %v1120_v57 }
 0x1e5   : > { %v1172_v60 = vpop.f32.mrf.mxu0  ;;  %v1221_v61 = vpop.f32.mrf.mxu1 }
 0x1e6   : > { %v1485_v62 = vmax.f32 %v1484_v54, %v1172_v60  ;;  %v1500_v63 = vmax.f32 %v1499_v55, %v1221_v61 }
 0x1e7   : > { %1269 = vmatmul.bf16.gmra.mxu2 %v2619_v8  ;;  %1318 = vmatmul.bf16.gmra.mxu3 %v2619_v8 }
 0x1e8   : > { %1367 = vmatmul.bf16.gmra.mxu0 %v2619_v8  ;;  %1416 = vmatmul.bf16.gmra.mxu1 %v2619_v8 }
 0x1ea   : > { %v1074_v52 = vpop.f32.mrf.mxu2  ;;  %v1123_v0 = vpop.f32.mrf.mxu3 }
 0x1eb   : > { %v1455_v1 = vmax.f32 %v1454_v58, %v1074_v52  ;;  %v1470_v3 = vmax.f32 %v1469_v59, %v1123_v0 }
 0x1ed   : > { %v1174_v4 = vpop.f32.mrf.mxu0  ;;  %v1223_v6 = vpop.f32.mrf.mxu1 }
 0x1ee   : > { %v1486_v7 = vmax.f32 %v1485_v62, %v1174_v4  ;;  %v1501_v9 = vmax.f32 %v1500_v63, %v1223_v6 }
 0x1f2   : > { %v1076_v10 = vpop.f32.mrf.mxu2  ;;  %v1125_v11 = vpop.f32.mrf.mxu3 }
 0x1f3   : > { %v1456_v12 = vmax.f32 %v1455_v1, %v1076_v10  ;;  %v1471_v15 = vmax.f32 %v1470_v3, %v1125_v11 }
 0x1f5   : > { %v1177_v16 = vpop.f32.mrf.mxu0  ;;  %v1226_v2 = vpop.f32.mrf.mxu1 }
 0x1f6   : > { %v1487_v17 = vmax.f32 %v1486_v7, %v1177_v16  ;;  %v1502_v18 = vmax.f32 %v1501_v9, %v1226_v2 }
 0x1f7   : > { %1274 = vmatmul.bf16.gmra.mxu2 %v2627_v29  ;;  %1323 = vmatmul.bf16.gmra.mxu3 %v2627_v29 }
 0x1f8   : > { %1372 = vmatmul.bf16.gmra.mxu0 %v2627_v29  ;;  %1421 = vmatmul.bf16.gmra.mxu1 %v2627_v29 }
 0x1fa   : > { %v1079_v8 = vpop.f32.mrf.mxu2  ;;  %v1128_v19 = vpop.f32.mrf.mxu3 }
 0x1fb   : > { %v1457_v20 = vmax.f32 %v1456_v12, %v1079_v8  ;;  %v1472_v21 = vmax.f32 %v1471_v15, %v1128_v19 }
 0x1fd   : > { %v1179_v23 = vpop.f32.mrf.mxu0  ;;  %v1228_v24 = vpop.f32.mrf.mxu1 }
 0x1fe   : > { %v1488_v25 = vmax.f32 %v1487_v17, %v1179_v23  ;;  %v1503_v26 = vmax.f32 %v1502_v18, %v1228_v24 }
 0x202   : > { %v1081_v27 = vpop.f32.mrf.mxu2  ;;  %v1130_v28 = vpop.f32.mrf.mxu3 }
 0x203   : > { %v1458_v30 = vmax.f32 %v1457_v20, %v1081_v27  ;;  %v1473_v31 = vmax.f32 %v1472_v21, %v1130_v28 }
 0x205   : > { %v1182_v14 = vpop.f32.mrf.mxu0  ;;  %v1231_v32 = vpop.f32.mrf.mxu1 }
 0x206   : > { %v1489_v33 = vmax.f32 %v1488_v25, %v1182_v14  ;;  %v1504_v35 = vmax.f32 %v1503_v26, %v1231_v32 }
 0x207   : > { %1279 = vmatmul.bf16.gmra.mxu2 %v2635_v48  ;;  %1328 = vmatmul.bf16.gmra.mxu3 %v2635_v48 }
 0x208   : > { %1377 = vmatmul.bf16.gmra.mxu0 %v2635_v48  ;;  %1426 = vmatmul.bf16.gmra.mxu1 %v2635_v48 }
 0x20a   : > { %v1084_v29 = vpop.f32.mrf.mxu2  ;;  %v1133_v36 = vpop.f32.mrf.mxu3 }
 0x20b   : > { %v1459_v37 = vmax.f32 %v1458_v30, %v1084_v29  ;;  %v1474_v38 = vmax.f32 %v1473_v31, %v1133_v36 }
 0x20d   : > { %v1184_v22 = vpop.f32.mrf.mxu0  ;;  %v1233_v39 = vpop.f32.mrf.mxu1 }
 0x20e   : > { %v1490_v40 = vmax.f32 %v1489_v33, %v1184_v22  ;;  %v1505_v41 = vmax.f32 %v1504_v35, %v1233_v39 }
 0x212   : > { %v1086_v42 = vpop.f32.mrf.mxu2  ;;  %v1135_v43 = vpop.f32.mrf.mxu3 }
 0x213   : > { %v1460_v44 = vmax.f32 %v1459_v37, %v1086_v42  ;;  %v1475_v45 = vmax.f32 %v1474_v38, %v1135_v43 }
 0x215   : > { %v1187_v46 = vpop.f32.mrf.mxu0  ;;  %v1236_v34 = vpop.f32.mrf.mxu1 }
 0x216   : > { %v1491_v47 = vmax.f32 %v1490_v40, %v1187_v46  ;;  %v1506_v49 = vmax.f32 %v1505_v41, %v1236_v34 }
 0x217   : > { %1284 = vmatmul.bf16.gmra.mxu2 %v2643_v5  ;;  %1333 = vmatmul.bf16.gmra.mxu3 %v2643_v5 }
 0x218   : > { %1382 = vmatmul.bf16.gmra.mxu0 %v2643_v5  ;;  %1431 = vmatmul.bf16.gmra.mxu1 %v2643_v5 }
 0x21a   : > { %v1089_v48 = vpop.f32.mrf.mxu2  ;;  %v1138_v51 = vpop.f32.mrf.mxu3 }
 0x21b   : > { %v1461_v50 = vmax.f32 %v1460_v44, %v1089_v48  ;;  %v1476_v53 = vmax.f32 %v1475_v45, %v1138_v51 }
 0x21d   : > { %v1189_v54 = vpop.f32.mrf.mxu0  ;;  %v1238_v55 = vpop.f32.mrf.mxu1 }
 0x21e   : > { %v1492_v56 = vmax.f32 %v1491_v47, %v1189_v54  ;;  %v1507_v57 = vmax.f32 %v1506_v49, %v1238_v55 }
 0x222   : > { %v1091_v58 = vpop.f32.mrf.mxu2  ;;  %v1140_v59 = vpop.f32.mrf.mxu3 }
 0x223   : > { %v1462_v60 = vmax.f32 %v1461_v50, %v1091_v58  ;;  %v1477_v61 = vmax.f32 %v1476_v53, %v1140_v59 }
 0x225   : > { %v1192_v62 = vpop.f32.mrf.mxu0  ;;  %v1241_v63 = vpop.f32.mrf.mxu1 }
 0x226   : > { %v1493_v52 = vmax.f32 %v1492_v56, %v1192_v62  ;;  %v1508_v0 = vmax.f32 %v1507_v57, %v1241_v63 }
 0x227   : > { %1289 = vmatmul.bf16.gmra.mxu2 %v2651_v13  ;;  %1338 = vmatmul.bf16.gmra.mxu3 %v2651_v13 }
 0x228   : > { %1387 = vmatmul.bf16.gmra.mxu0 %v2651_v13  ;;  %1436 = vmatmul.bf16.gmra.mxu1 %v2651_v13  ;;  %v2692_v13 = vld [vmem:[%s2752_s6] sm:$0xff] }
 0x229   : > { %v1649_v14 = vperm.slane %v2692_v13, 2  ;;  %v1650_v33 = vperm.slane %v2692_v13, 3  ;;  %v1647_v44 = vperm.slane %v2692_v13, 0  ;;  %v1648_v46 = vperm.slane %v2692_v13, 1 }
 0x22a   : > { %v1094_v5 = vpop.f32.mrf.mxu2  ;;  %v1143_v1 = vpop.f32.mrf.mxu3 }
 0x22b   : > { %v1463_v3 = vmax.f32 %v1462_v60, %v1094_v5  ;;  %v1478_v4 = vmax.f32 %v1477_v61, %v1143_v1 }
 0x22d   : > { %v1194_v6 = vpop.f32.mrf.mxu0  ;;  %v1243_v7 = vpop.f32.mrf.mxu1 }
 0x22e   : > { %v1494_v9 = vmax.f32 %v1493_v52, %v1194_v6  ;;  %v1509_v10 = vmax.f32 %v1508_v0, %v1243_v7 }
 0x230   : > { %v1609_v11 = vrot.slane %v1494_v9, 4  ;;  %v1615_v12 = vrot.slane %v1509_v10, 4 }
 0x232   : > { %v1610_v15 = vmax.f32 %v1494_v9, %v1609_v11  ;;  %v1616_v16 = vmax.f32 %v1509_v10, %v1615_v12  ;;  %v1096_v2 = vpop.f32.mrf.mxu2  ;;  %v1145_v17 = vpop.f32.mrf.mxu3 }
 0x233   : > { %v1464_v18 = vmax.f32 %v1463_v3, %v1096_v2  ;;  %v1479_v8 = vmax.f32 %v1478_v4, %v1145_v17 }
 0x234   : > { %v1611_v19 = vrot.slane %v1610_v15, 2  ;;  %v1617_v20 = vrot.slane %v1616_v16, 2 }
 0x235   : > { %v1597_v21 = vrot.slane %v1464_v18, 4  ;;  %v1603_v23 = vrot.slane %v1479_v8, 4  ;;  %v1353_v24 = vpop.f32.mrf.mxu0  ;;  %v1402_v25 = vpop.f32.mrf.mxu1 }
 0x236   : > { %v1612_v26 = vmax.f32 %v1610_v15, %v1611_v19  ;;  %v1618_v27 = vmax.f32 %v1616_v16, %v1617_v20 }
 0x237   : > { %v1598_v28 = vmax.f32 %v1464_v18, %v1597_v21  ;;  %v1604_v30 = vmax.f32 %v1479_v8, %v1603_v23 }
 0x238   : > { %v1613_v31 = vrot.slane %v1612_v26, 1  ;;  %v1619_v32 = vrot.slane %v1618_v27, 1 }
 0x239   : > { %v1599_v35 = vrot.slane %v1598_v28, 2  ;;  %v1605_v29 = vrot.slane %v1604_v30, 2 }
 0x23a   : > { %v1614_v36 = vmax.f32 %v1612_v26, %v1613_v31  ;;  %v1620_v37 = vmax.f32 %v1618_v27, %v1619_v32  ;;  %v1255_v38 = vpop.f32.mrf.mxu2  ;;  %v1304_v22 = vpop.f32.mrf.mxu3 }
 0x23b   : > { %v1600_v39 = vmax.f32 %v1598_v28, %v1599_v35  ;;  %v1606_v40 = vmax.f32 %v1604_v30, %v1605_v29 }
 0x23c   : > { %v1665_v41 = vadd.f32 %v1649_v14, %v1614_v36  ;;  %v1666_v42 = vadd.f32 %v1650_v33, %v1620_v37 }
 0x23d   : > { %v1601_v43 = vrot.slane %v1600_v39, 1  ;;  %v1607_v45 = vrot.slane %v1606_v40, 1  ;;  %v1355_v34 = vpop.f32.mrf.mxu0  ;;  %v1404_v47 = vpop.f32.mrf.mxu1 }
 0x23e   : > { %v1673_v49 = vmax.f32 %v1665_v41, 0.0  ;;  %v1674_v48 = vmax.f32 %v1666_v42, 0.0  ;;  %v1540_v51 = vmax.f32 %v1353_v24, %v1355_v34  ;;  %v1555_v50 = vmax.f32 %v1402_v25, %v1404_v47 }
 0x23f   : > { %v1602_v53 = vmax.f32 %v1600_v39, %v1601_v43  ;;  %v1608_v54 = vmax.f32 %v1606_v40, %v1607_v45 }
 0x240   : > { %v1688_v55 = vrot.slane %v1673_v49, 6  ;;  %v1689_v56 = vrot.slane %v1674_v48, 5 }
 0x241   : > { %v1663_v57 = vadd.f32 %v1647_v44, %v1602_v53  ;;  %v1664_v58 = vadd.f32 %v1648_v46, %v1608_v54 }
 0x242   : > { %v1257_v59 = vpop.f32.mrf.mxu2  ;;  %v1306_v60 = vpop.f32.mrf.mxu3  ;;  %v1697_v61 = vsel %vm1696_vm2, %v1688_v55, %v1689_v56 }
 0x243   : > { %v1672_v62 = vmax.f32 %v1664_v58, 0.0  ;;  %v1510_v63 = vmax.f32 %v1255_v38, %v1257_v59  ;;  %v1525_v52 = vmax.f32 %v1304_v22, %v1306_v60  ;;  %v1671_v0 = vmax.f32 %v1663_v57, 0.0 }
 0x245   : > { %v1687_v5 = vrot.slane %v1672_v62, 7  ;;  %v1358_v1 = vpop.f32.mrf.mxu0  ;;  %v1407_v3 = vpop.f32.mrf.mxu1 }
 0x246   : > { %v1541_v4 = vmax.f32 %v1540_v51, %v1358_v1  ;;  %v1556_v6 = vmax.f32 %v1555_v50, %v1407_v3 }
 0x247   : > { %v1695_v7 = vsel %vm1694_vm3, %v1671_v0, %v1687_v5 }
 0x248   : > { %v2698_v9 = vsel %vm1698_vm4, %v1695_v7, %v1697_v61 }
 0x24a   : > { %v1260_v10 = vpop.f32.mrf.mxu2  ;;  %v1309_v11 = vpop.f32.mrf.mxu3 }
 0x24b   : > { %v1511_v12 = vmax.f32 %v1510_v63, %v1260_v10  ;;  %v1526_v15 = vmax.f32 %v1525_v52, %v1309_v11 }
 0x24d   : > { %v1360_v16 = vpop.f32.mrf.mxu0  ;;  %v1409_v2 = vpop.f32.mrf.mxu1 }
 0x24e   : > { %v1542_v17 = vmax.f32 %v1541_v4, %v1360_v16  ;;  %v1557_v18 = vmax.f32 %v1556_v6, %v1409_v2 }
 0x252   : > { %v1262_v8 = vpop.f32.mrf.mxu2  ;;  %v1311_v19 = vpop.f32.mrf.mxu3 }
 0x253   : > { %v1512_v20 = vmax.f32 %v1511_v12, %v1262_v8  ;;  %v1527_v21 = vmax.f32 %v1526_v15, %v1311_v19 }
 0x255   : > { %v1363_v23 = vpop.f32.mrf.mxu0  ;;  %v1412_v24 = vpop.f32.mrf.mxu1 }
 0x256   : > { %v1543_v25 = vmax.f32 %v1542_v17, %v1363_v23  ;;  %v1558_v26 = vmax.f32 %v1557_v18, %v1412_v24 }
 0x25a   : > { %v1265_v27 = vpop.f32.mrf.mxu2  ;;  %v1314_v28 = vpop.f32.mrf.mxu3 }
 0x25b   : > { %v1513_v30 = vmax.f32 %v1512_v20, %v1265_v27  ;;  %v1528_v31 = vmax.f32 %v1527_v21, %v1314_v28 }
 0x25d   : > { %v1365_v14 = vpop.f32.mrf.mxu0  ;;  %v1414_v32 = vpop.f32.mrf.mxu1 }
 0x25e   : > { %v1544_v60 = vmax.f32 %v1543_v25, %v1365_v14  ;;  %v1559_v61 = vmax.f32 %v1558_v26, %v1414_v32 }
 0x262   : > { %v1267_v33 = vpop.f32.mrf.mxu2  ;;  %v1316_v35 = vpop.f32.mrf.mxu3 }
 0x263   : > { %v1514_v6 = vmax.f32 %v1513_v30, %v1267_v33  ;;  %v1529_v7 = vmax.f32 %v1528_v31, %v1316_v35 }
 0x265   : > { %v1368_v29 = vpop.f32.mrf.mxu0  ;;  %v1417_v36 = vpop.f32.mrf.mxu1 }
 0x266   : > { %v1545_v52 = vmax.f32 %v1544_v60, %v1368_v29  ;;  %v1560_v0 = vmax.f32 %v1559_v61, %v1417_v36 }
 0x26a   : > { %v1270_v37 = vpop.f32.mrf.mxu2  ;;  %v1319_v38 = vpop.f32.mrf.mxu3 }
 0x26b   : > { %v1515_v12 = vmax.f32 %v1514_v6, %v1270_v37  ;;  %v1530_v15 = vmax.f32 %v1529_v7, %v1319_v38  ;;  %v1654_v7 = vperm.slane %v2692_v13, 7 }
 0x26d   : > { %v1370_v22 = vpop.f32.mrf.mxu0  ;;  %v1419_v39 = vpop.f32.mrf.mxu1 }
 0x26e   : > { %v1546_v3 = vmax.f32 %v1545_v52, %v1370_v22  ;;  %v1561_v4 = vmax.f32 %v1560_v0, %v1419_v39 }
 0x272   : > { %v1272_v40 = vpop.f32.mrf.mxu2  ;;  %v1321_v41 = vpop.f32.mrf.mxu3 }
 0x273   : > { %v1516_v8 = vmax.f32 %v1515_v12, %v1272_v40  ;;  %v1531_v19 = vmax.f32 %v1530_v15, %v1321_v41 }
 0x275   : > { %v1373_v42 = vpop.f32.mrf.mxu0  ;;  %v1422_v43 = vpop.f32.mrf.mxu1 }
 0x276   : > { %v1547_v10 = vmax.f32 %v1546_v3, %v1373_v42  ;;  %v1562_v11 = vmax.f32 %v1561_v4, %v1422_v43  ;;  %v1653_v4 = vperm.slane %v2692_v13, 6 }
 0x27a   : > { %v1275_v44 = vpop.f32.mrf.mxu2  ;;  %v1324_v45 = vpop.f32.mrf.mxu3 }
 0x27b   : > { %v1517_v23 = vmax.f32 %v1516_v8, %v1275_v44  ;;  %v1532_v24 = vmax.f32 %v1531_v19, %v1324_v45  ;;  %v1651_v19 = vperm.slane %v2692_v13, 4 }
 0x27d   : > { %v1375_v46 = vpop.f32.mrf.mxu0  ;;  %v1424_v34 = vpop.f32.mrf.mxu1 }
 0x27e   : > { %v1548_v16 = vmax.f32 %v1547_v10, %v1375_v46  ;;  %v1563_v2 = vmax.f32 %v1562_v11, %v1424_v34 }
 0x282   : > { %v1277_v47 = vpop.f32.mrf.mxu2  ;;  %v1326_v49 = vpop.f32.mrf.mxu3 }
 0x283   : > { %v1518_v30 = vmax.f32 %v1517_v23, %v1277_v47  ;;  %v1533_v31 = vmax.f32 %v1532_v24, %v1326_v49 }
 0x285   : > { %v1378_v48 = vpop.f32.mrf.mxu0  ;;  %v1427_v51 = vpop.f32.mrf.mxu1 }
 0x286   : > { %v1549_v20 = vmax.f32 %v1548_v16, %v1378_v48  ;;  %v1564_v21 = vmax.f32 %v1563_v2, %v1427_v51 }
 0x28a   : > { %v1280_v50 = vpop.f32.mrf.mxu2  ;;  %v1329_v53 = vpop.f32.mrf.mxu3 }
 0x28b   : > { %v1519_v33 = vmax.f32 %v1518_v30, %v1280_v50  ;;  %v1534_v35 = vmax.f32 %v1533_v31, %v1329_v53 }
 0x28d   : > { %v1380_v54 = vpop.f32.mrf.mxu0  ;;  %v1429_v55 = vpop.f32.mrf.mxu1 }
 0x28e   : > { %v1550_v27 = vmax.f32 %v1549_v20, %v1380_v54  ;;  %v1565_v28 = vmax.f32 %v1564_v21, %v1429_v55  ;;  %v1652_v21 = vperm.slane %v2692_v13, 5 }
 0x292   : > { %v1282_v56 = vpop.f32.mrf.mxu2  ;;  %v1331_v57 = vpop.f32.mrf.mxu3 }
 0x293   : > { %v1520_v22 = vmax.f32 %v1519_v33, %v1282_v56  ;;  %v1535_v39 = vmax.f32 %v1534_v35, %v1331_v57 }
 0x295   : > { %v1383_v58 = vpop.f32.mrf.mxu0  ;;  %v1432_v59 = vpop.f32.mrf.mxu1 }
 0x296   : > { %v1551_v14 = vmax.f32 %v1550_v27, %v1383_v58  ;;  %v1566_v32 = vmax.f32 %v1565_v28, %v1432_v59 }
 0x29a   : > { %v1285_v62 = vpop.f32.mrf.mxu2  ;;  %v1334_v63 = vpop.f32.mrf.mxu3 }
 0x29b   : > { %v1521_v42 = vmax.f32 %v1520_v22, %v1285_v62  ;;  %v1536_v43 = vmax.f32 %v1535_v39, %v1334_v63 }
 0x29d   : > { %v1385_v5 = vpop.f32.mrf.mxu0  ;;  %v1434_v1 = vpop.f32.mrf.mxu1 }
 0x29e   : > { %v1552_v29 = vmax.f32 %v1551_v14, %v1385_v5  ;;  %v1567_v36 = vmax.f32 %v1566_v32, %v1434_v1 }
 0x2a2   : > { %v1287_v17 = vpop.f32.mrf.mxu2  ;;  %v1336_v18 = vpop.f32.mrf.mxu3 }
 0x2a3   : > { %v1522_v47 = vmax.f32 %v1521_v42, %v1287_v17  ;;  %v1537_v49 = vmax.f32 %v1536_v43, %v1336_v18 }
 0x2a5   : > { %v1388_v25 = vpop.f32.mrf.mxu0  ;;  %v1437_v26 = vpop.f32.mrf.mxu1 }
 0x2a6   : > { %v1553_v40 = vmax.f32 %v1552_v29, %v1388_v25  ;;  %v1568_v41 = vmax.f32 %v1567_v36, %v1437_v26 }
 0x2aa   : > { %v1290_v37 = vpop.f32.mrf.mxu2  ;;  %v1339_v38 = vpop.f32.mrf.mxu3 }
 0x2ab   : > { %v1523_v50 = vmax.f32 %v1522_v47, %v1290_v37  ;;  %v1538_v53 = vmax.f32 %v1537_v49, %v1339_v38 }
 0x2ad   : > { %v1390_v44 = vpop.f32.mrf.mxu0  ;;  %v1439_v45 = vpop.f32.mrf.mxu1 }
 0x2ae   : > { %v1554_v46 = vmax.f32 %v1553_v40, %v1390_v44  ;;  %v1569_v34 = vmax.f32 %v1568_v41, %v1439_v45 }
 0x2b0   : > { %v1633_v48 = vrot.slane %v1554_v46, 4  ;;  %v1639_v51 = vrot.slane %v1569_v34, 4 }
 0x2b2   : > { %v1634_v54 = vmax.f32 %v1554_v46, %v1633_v48  ;;  %v1640_v55 = vmax.f32 %v1569_v34, %v1639_v51  ;;  %v1292_v58 = vpop.f32.mrf.mxu2  ;;  %v1341_v59 = vpop.f32.mrf.mxu3 }
 0x2b3   : > { %v1524_v56 = vmax.f32 %v1523_v50, %v1292_v58  ;;  %v1539_v57 = vmax.f32 %v1538_v53, %v1341_v59 }
 0x2b4   : > { %v1635_v60 = vrot.slane %v1634_v54, 2  ;;  %v1641_v61 = vrot.slane %v1640_v55, 2 }
 0x2b5   : > { %v1621_v62 = vrot.slane %v1524_v56, 4  ;;  %v1627_v63 = vrot.slane %v1539_v57, 4 }
 0x2b6   : > { %v1636_v52 = vmax.f32 %v1634_v54, %v1635_v60  ;;  %v1642_v0 = vmax.f32 %v1640_v55, %v1641_v61 }
 0x2b7   : > { %v1622_v5 = vmax.f32 %v1524_v56, %v1621_v62  ;;  %v1628_v1 = vmax.f32 %v1539_v57, %v1627_v63 }
 0x2b8   : > { %v1637_v3 = vrot.slane %v1636_v52, 1  ;;  %v1643_v6 = vrot.slane %v1642_v0, 1 }
 0x2b9   : > { %v1623_v10 = vrot.slane %v1622_v5, 2  ;;  %v1629_v11 = vrot.slane %v1628_v1, 2 }
 0x2ba   : > { %v1638_v12 = vmax.f32 %v1636_v52, %v1637_v3  ;;  %v1644_v15 = vmax.f32 %v1642_v0, %v1643_v6 }
 0x2bb   : > { %v1624_v16 = vmax.f32 %v1622_v5, %v1623_v10  ;;  %v1630_v2 = vmax.f32 %v1628_v1, %v1629_v11 }
 0x2bc   : > { %v1669_v17 = vadd.f32 %v1653_v4, %v1638_v12  ;;  %v1670_v18 = vadd.f32 %v1654_v7, %v1644_v15 }
 0x2bd   : > { %v1625_v8 = vrot.slane %v1624_v16, 1  ;;  %v1631_v20 = vrot.slane %v1630_v2, 1 }
 0x2be   : > { %v1677_v23 = vmax.f32 %v1669_v17, 0.0  ;;  %v1678_v24 = vmax.f32 %v1670_v18, 0.0 }
 0x2bf   : > { %v1626_v25 = vmax.f32 %v1624_v16, %v1625_v8  ;;  %v1632_v26 = vmax.f32 %v1630_v2, %v1631_v20 }
 0x2c0   : > { %v1692_v27 = vrot.slane %v1677_v23, 2  ;;  %v1693_v28 = vrot.slane %v1678_v24, 1 }
 0x2c1   : > { %v1667_v30 = vadd.f32 %v1651_v19, %v1626_v25  ;;  %v1668_v31 = vadd.f32 %v1652_v21, %v1632_v26 }
 0x2c2   : > { %v1703_v14 = vsel %vm1702_vm5, %v1692_v27, %v1693_v28 }
 0x2c3   : > { %v1675_v32 = vmax.f32 %v1667_v30, 0.0  ;;  %v1676_v13 = vmax.f32 %v1668_v31, 0.0 }
 0x2c5   : > { %v1690_v33 = vrot.slane %v1675_v32, 4  ;;  %v1691_v35 = vrot.slane %v1676_v13, 3 }
 0x2c7   : > { %v1701_v29 = vsel %vm1700_vm6, %v1690_v33, %v1691_v35 }
 0x2c8   : > { %v1705_v36 = vsel %vm1704_vm7, %v1701_v29, %v1703_v14 }
 0x2c9   : > { %v1707_v37 = vsel %vm1706_vm8, %v2698_v9, %v1705_v36 }
 0x2ca   : > { %1709 = vst [vmem:[%s342_s23] sm:$0xff] %v1707_v37 }
 0x2cb   : > { %2344 = shalt.err (!%p2341_p9)
}
 0x2cc   : > { %2221 = dma.vmem_to_hbm [thread:$0]  (%p2484_p4), %s1726_s30, 128, %s1728_s27, %s1711_s8  }
 0x2cd PF: > { %p2233_p10 = scmp.ge.s32.totalorder %s2399_s29, 2  ;;  %s1739_s17 = sand.u32 1, %s2379_s24  }
 0x2ce   : > { %s1740_s21 = scalar_lea.sflag [#allocation5], %s1739_s17 }
 0x2cf   : > { %p2228_p11 = pnand %p2233_p10, %p2491_p8 }
 0x2d1   : > { %p2229_p12 = pneg %p2228_p11 }
 0x2d3   : > { %2374 = dma.done.wait (%p2229_p12), %s1740_s21, 128  }
 0x2d4   : > { %2376 = vsyncadd (%p2229_p12), %s1740_s21, 4294967168  ;;  %s21_s29 = sadd.s32 1, %s2399_s29   ;;  %s2756_s24 = smov %s2383_s25 }
 0x2d5   : > { %p18_p13 = scmp.ge.s32.totalorder %s21_s29, 4   ;;  %s2757_s25 = smov %s2387_s26 }
 0x2d6   : > { %s2758_s26 = smov %s2497_s14  ;;  %s2759_s27 = smov %s2395_s28 }
 0x2d7   : > { %s2760_s28 = smov %s2762_s9  ;;  %20 = sbr.rel (!%p18_p13) target bundleno = 5 (0x5), region = 100 }
 0x2dc   :  { %1746 = vsyncpa [#allocation4], 1 }
 0x2dd   :  { %1748 = vsyncpa [#allocation4 + $0x1], 1 }
 0x2de   :  { %1749 = vsyncpa [#allocation5], 1 }
 0x2df   :  { %1751 = vsyncpa [#allocation5 + $0x1], 1 }

</bundles_post_ra>
